<compile_context>
chip_gen: v7x
topology: tpu7x:2x2x1
jax: 0.10.0
libtpu: 0.0.40
codegen_flags: <defaults>
</compile_context>

<pallas_src>
import functools

import jax
import jax.numpy as jnp
from jax.experimental import pallas as pl
from jax.experimental.pallas import tpu as pltpu

VMEM_LIMIT = 48 * 1024 * 1024   # headroom under v7x's 64 MiB per-TC VMEM
LN_EPS = 1e-5


def _round_up(x, m):
    return ((x + m - 1) // m) * m


# --------------------------------------------------------------------------
# Tiled matmul kernel (used for the patch embedding)
# --------------------------------------------------------------------------
def _matmul_kernel(x_ref, w_ref, b_ref, o_ref, acc_ref, *, activation):
    @pl.when(pl.program_id(2) == 0)
    def _init():
        acc_ref[...] = jnp.zeros_like(acc_ref)

    acc_ref[...] += jnp.dot(x_ref[...], w_ref[...],
                            preferred_element_type=jnp.float32)

    @pl.when(pl.program_id(2) == pl.num_programs(2) - 1)
    def _finalize():
        y = acc_ref[...] + b_ref[...].astype(jnp.float32)
        if activation == "relu":
            y = jnp.maximum(y, 0.0)
        o_ref[...] = y.astype(o_ref.dtype)


def linear_tiled(x, w_t, b, activation=None, *, tm=256, tn=256, tk=512):
    """x: (M, K), w_t: (K, N), b: (N,) -> (M, N) f32 (bf16 MXU, f32 acc)."""
    M, K = x.shape
    N = w_t.shape[1]
    tm = min(tm, _round_up(M, 8))
    tn = min(tn, _round_up(N, 128))
    tk = min(tk, _round_up(K, 128))
    Mp, Kp, Np = _round_up(M, tm), _round_up(K, tk), _round_up(N, tn)

    xp = jnp.pad(x.astype(jnp.bfloat16), ((0, Mp - M), (0, Kp - K)))
    wp = jnp.pad(w_t.astype(jnp.bfloat16), ((0, Kp - K), (0, Np - N)))
    bp = jnp.pad(b.astype(jnp.float32), (0, Np - N)).reshape(1, Np)

    out = pl.pallas_call(
        functools.partial(_matmul_kernel, activation=activation),
        grid=(Mp // tm, Np // tn, Kp // tk),
        out_shape=jax.ShapeDtypeStruct((Mp, Np), jnp.float32),
        in_specs=[
            pl.BlockSpec((tm, tk), lambda i, j, k: (i, k)),
            pl.BlockSpec((tk, tn), lambda i, j, k: (k, j)),
            pl.BlockSpec((1, tn), lambda i, j, k: (0, j)),
        ],
        out_specs=pl.BlockSpec((tm, tn), lambda i, j, k: (i, j)),
        scratch_shapes=[pltpu.VMEM((tm, tn), jnp.float32)],
        compiler_params=pltpu.CompilerParams(
            dimension_semantics=("parallel", "parallel", "arbitrary"),
            vmem_limit_bytes=VMEM_LIMIT),
    )(xp, wp, bp)
    return out[:M, :N]


# --------------------------------------------------------------------------
# Fused attention block:  LN(x + OutProj(MHA(x)))   — one grid step per batch
# --------------------------------------------------------------------------
def _layernorm(y, g, b, eps):
    mean = jnp.mean(y, axis=-1, keepdims=True)
    var = jnp.mean((y - mean) ** 2, axis=-1, keepdims=True)
    return (y - mean) * jax.lax.rsqrt(var + eps) * g + b


def _attn_block_kernel(x_ref, wqkv_ref, bqkv_ref, wo_ref, bo_ref,
                       g_ref, beta_ref, o_ref, *, heads, scale, eps):
    x = x_ref[0]                                       # (S, D) f32
    S, D = x.shape
    Dh = D // heads

    # lane-dense (S, 3D) QKV projection on the MXU (bf16 in, f32 acc)
    qkv = jnp.dot(x.astype(jnp.bfloat16), wqkv_ref[...],
                  preferred_element_type=jnp.float32)
    qkv = qkv + bqkv_ref[...].astype(jnp.float32)      # (S, 3D)

    # per-head attention fused with the output projection:
    #   concat_h(attn_h) @ Wo == sum_h attn_h @ Wo[h*Dh:(h+1)*Dh, :]
    proj = jnp.zeros((S, D), jnp.float32)
    for h in range(heads):                             # static unroll
        qh = (qkv[:, h * Dh:(h + 1) * Dh] * scale).astype(jnp.bfloat16)
        kh = qkv[:, D + h * Dh:D + (h + 1) * Dh].astype(jnp.bfloat16)
        vh = qkv[:, 2 * D + h * Dh:2 * D + (h + 1) * Dh].astype(jnp.bfloat16)

        s = jax.lax.dot_general(qh, kh, (((1,), (1,)), ((), ())),
                                preferred_element_type=jnp.float32)  # (S, S)
        s = s - jnp.max(s, axis=-1, keepdims=True)
        p = jnp.exp(s)
        p = p * pl.reciprocal(jnp.sum(p, axis=-1, keepdims=True), approx=True)

        oh = jnp.dot(p.astype(jnp.bfloat16), vh,
                     preferred_element_type=jnp.float32)             # (S, Dh)
        proj = proj + jnp.dot(oh.astype(jnp.bfloat16),
                              wo_ref[pl.ds(h * Dh, Dh), :],
                              preferred_element_type=jnp.float32)    # (S, D)

    proj = proj + bo_ref[...].astype(jnp.float32)
    y = _layernorm(x + proj, g_ref[...], beta_ref[...], eps)          # post-LN
    o_ref[0] = y.astype(o_ref.dtype)


def attn_block(x, wqkv, bqkv, wo, bo, gamma, beta, *, heads, eps=LN_EPS):
    B, S, D = x.shape
    scale = 1.0 / float(D // heads) ** 0.5
    return pl.pallas_call(
        functools.partial(_attn_block_kernel, heads=heads, scale=scale, eps=eps),
        grid=(B,),
        out_shape=jax.ShapeDtypeStruct((B, S, D), jnp.float32),
        in_specs=[
            pl.BlockSpec((1, S, D), lambda b: (b, 0, 0)),
            pl.BlockSpec((D, 3 * D), lambda b: (0, 0)),
            pl.BlockSpec((1, 3 * D), lambda b: (0, 0)),
            pl.BlockSpec((D, D), lambda b: (0, 0)),
            pl.BlockSpec((1, D), lambda b: (0, 0)),
            pl.BlockSpec((1, D), lambda b: (0, 0)),
            pl.BlockSpec((1, D), lambda b: (0, 0)),
        ],
        out_specs=pl.BlockSpec((1, S, D), lambda b: (b, 0, 0)),
        compiler_params=pltpu.CompilerParams(
            dimension_semantics=("parallel",),
            vmem_limit_bytes=VMEM_LIMIT),
    )(x, wqkv, bqkv.reshape(1, -1), wo, bo.reshape(1, -1),
      gamma.reshape(1, -1), beta.reshape(1, -1))


# --------------------------------------------------------------------------
# Fused MLP block:  LN(x + W2 @ relu(W1 @ x + b1) + b2)
# --------------------------------------------------------------------------
def _mlp_block_kernel(x_ref, w1_ref, b1_ref, w2_ref, b2_ref,
                      g_ref, beta_ref, o_ref, *, eps):
    x = x_ref[0]                                       # (S, D) f32
    h = jnp.dot(x.astype(jnp.bfloat16), w1_ref[...],
                preferred_element_type=jnp.float32)
    h = jnp.maximum(h + b1_ref[...].astype(jnp.float32), 0.0)
    y = jnp.dot(h.astype(jnp.bfloat16), w2_ref[...],
                preferred_element_type=jnp.float32)
    y = y + b2_ref[...].astype(jnp.float32)
    y = _layernorm(x + y, g_ref[...], beta_ref[...], eps)
    o_ref[0] = y.astype(o_ref.dtype)


def mlp_block(x, w1, b1, w2, b2, gamma, beta, *, eps=LN_EPS):
    B, S, D = x.shape
    F = w1.shape[1]
    return pl.pallas_call(
        functools.partial(_mlp_block_kernel, eps=eps),
        grid=(B,),
        out_shape=jax.ShapeDtypeStruct((B, S, D), jnp.float32),
        in_specs=[
            pl.BlockSpec((1, S, D), lambda b: (b, 0, 0)),
            pl.BlockSpec((D, F), lambda b: (0, 0)),
            pl.BlockSpec((1, F), lambda b: (0, 0)),
            pl.BlockSpec((F, D), lambda b: (0, 0)),
            pl.BlockSpec((1, D), lambda b: (0, 0)),
            pl.BlockSpec((1, D), lambda b: (0, 0)),
            pl.BlockSpec((1, D), lambda b: (0, 0)),
        ],
        out_specs=pl.BlockSpec((1, S, D), lambda b: (b, 0, 0)),
        compiler_params=pltpu.CompilerParams(
            dimension_semantics=("parallel",),
            vmem_limit_bytes=VMEM_LIMIT),
    )(x, w1, b1.reshape(1, -1), w2, b2.reshape(1, -1),
      gamma.reshape(1, -1), beta.reshape(1, -1))


# --------------------------------------------------------------------------
# Fused mean-pool + classifier (classifier dim pre-padded to 128-multiple)
# --------------------------------------------------------------------------
def _pool_fc_kernel(x_ref, w_ref, b_ref, o_ref):
    x = x_ref[...]                                     # (B, S, D) f32
    pooled = jnp.mean(x, axis=1)                       # (B, D) f32
    y = jnp.dot(pooled.astype(jnp.bfloat16), w_ref[...],
                preferred_element_type=jnp.float32)
    o_ref[...] = (y + b_ref[...].astype(jnp.float32)).astype(o_ref.dtype)


def pool_fc(x, w_t_pad, b_pad, num_classes):
    B, S, D = x.shape
    Ncp = w_t_pad.shape[1]
    out = pl.pallas_call(
        _pool_fc_kernel,
        grid=(1,),
        out_shape=jax.ShapeDtypeStruct((B, Ncp), jnp.float32),
        in_specs=[
            pl.BlockSpec((B, S, D), lambda i: (0, 0, 0)),
            pl.BlockSpec((D, Ncp), lambda i: (0, 0)),
            pl.BlockSpec((1, Ncp), lambda i: (0, 0)),
        ],
        out_specs=pl.BlockSpec((B, Ncp), lambda i: (0, 0)),
        compiler_params=pltpu.CompilerParams(
            dimension_semantics=("arbitrary",),
            vmem_limit_bytes=VMEM_LIMIT),
    )(x, w_t_pad, b_pad.reshape(1, -1))
    return out[:, :num_classes]


# --------------------------------------------------------------------------
# Parameter init (deterministic, synthetic).  Matmul weights stored in bf16
# (halves HBM weight traffic); biases / LN / cls / pos stay f32.
# --------------------------------------------------------------------------
def init_params(key, *, channels, patch, dim, depth, mlp_dim, num_classes,
                num_patches):
    keys = jax.random.split(key, depth + 4)

    def nrm(k, shape, s=0.02, dtype=jnp.bfloat16):
        return (jax.random.normal(k, shape, jnp.float32) * s).astype(dtype)

    patch_dim = channels * patch * patch
    ncp = _round_up(num_classes, 128)                  # lane-dense classifier
    fc_w = nrm(keys[3 + depth], (dim, num_classes), dtype=jnp.float32)

    params = {
        # Conv2d(kernel=stride=patch) == patch-flatten matmul; weight stored
        # as (patch_dim, dim) i.e. already transposed for x @ w.
        "patch_w_t": nrm(keys[0], (patch_dim, dim)),
        "patch_b": jnp.zeros((dim,), jnp.float32),
        "cls": nrm(keys[1], (1, 1, dim), 1.0, jnp.float32),
        "pos": nrm(keys[2], (num_patches + 1, dim), 1.0, jnp.float32),
        "fc_w_t": jnp.pad(fc_w, ((0, 0), (0, ncp - num_classes))
                          ).astype(jnp.bfloat16),
        "fc_b": jnp.zeros((ncp,), jnp.float32),
        "layers": [],
    }
    for l in range(depth):
        lk = jax.random.split(keys[3 + l], 4)
        params["layers"].append(dict(
            in_proj_w_t=nrm(lk[0], (dim, 3 * dim)),
            in_proj_b=jnp.zeros((3 * dim,), jnp.float32),
            out_proj_w_t=nrm(lk[1], (dim, dim)),
            out_proj_b=jnp.zeros((dim,), jnp.float32),
            ln1_g=jnp.ones((dim,), jnp.float32),
            ln1_b=jnp.zeros((dim,), jnp.float32),
            ff1_w_t=nrm(lk[2], (dim, mlp_dim)),
            ff1_b=jnp.zeros((mlp_dim,), jnp.float32),
            ff2_w_t=nrm(lk[3], (mlp_dim, dim)),
            ff2_b=jnp.zeros((dim,), jnp.float32),
            ln2_g=jnp.ones((dim,), jnp.float32),
            ln2_b=jnp.zeros((dim,), jnp.float32),
        ))
    return params


# --------------------------------------------------------------------------
# Forward pass
# --------------------------------------------------------------------------
def vit_forward(x, params, *, patch, heads, num_classes):
    B, C, H, W = x.shape
    Hp, Wp = H // patch, W // patch
    n_patches = Hp * Wp
    D = params["patch_w_t"].shape[1]

    # -- patch embedding: Conv2d(k=s=patch) == per-patch flatten + tiled matmul
    patches = (x.reshape(B, C, Hp, patch, Wp, patch)
                 .transpose(0, 2, 4, 1, 3, 5)
                 .reshape(B * n_patches, C * patch * patch))
    emb = linear_tiled(patches, params["patch_w_t"], params["patch_b"])
    emb = emb.reshape(B, n_patches, D)

    # -- cls token + positional embedding (glue: concat + broadcast add)
    cls = jnp.broadcast_to(params["cls"], (B, 1, D))
    xt = jnp.concatenate([cls, emb], axis=1) + params["pos"][None, :, :]

    # -- transformer encoder layers (PyTorch defaults: post-LN, ReLU FFN),
    #    two fused pallas_calls per layer, no JAX glue in between.
    for lp in params["layers"]:
        xt = attn_block(xt, lp["in_proj_w_t"], lp["in_proj_b"],
                        lp["out_proj_w_t"], lp["out_proj_b"],
                        lp["ln1_g"], lp["ln1_b"], heads=heads)
        xt = mlp_block(xt, lp["ff1_w_t"], lp["ff1_b"],
                       lp["ff2_w_t"], lp["ff2_b"],
                       lp["ln2_g"], lp["ln2_b"])

    # -- mean over tokens + classifier head (fused, lane-dense padded classes)
    return pool_fc(xt, params["fc_w_t"], params["fc_b"], num_classes)


# --------------------------------------------------------------------------
if __name__ == "__main__":
    key = jax.random.PRNGKey(0)
    kx, kp = jax.random.split(key)

    # Small, forward-consistent shapes (scaled-down ViT).
    B, C, H, W = 2, 3, 16, 16
    patch, dim, depth, heads = 4, 128, 2, 4
    mlp_dim, num_classes = 256, 16
    num_patches = (H // patch) * (W // patch)

    x = jax.random.normal(kx, (B, C, H, W), jnp.float32)
    params = init_params(kp, channels=C, patch=patch, dim=dim, depth=depth,
                         mlp_dim=mlp_dim, num_classes=num_classes,
                         num_patches=num_patches)

    @jax.jit
    def fwd(x, params):
        return vit_forward(x, params, patch=patch, heads=heads,
                           num_classes=num_classes)

    out = fwd(x, params)
    out = jax.block_until_ready(out)
    assert out.shape == (B, num_classes)
    assert bool(jnp.all(jnp.isfinite(out)))
    print("KERNEL_OK")
</pallas_src>

<mosaic_0001>
module attributes {stable_mosaic.version = 11 : i64} {
  func.func @_matmul_kernel(%arg0: i32, %arg1: i32, %arg2: i32, %arg3: memref<32x128xbf16, #tpu.memory_space<vmem>>, %arg4: memref<128x128xbf16, #tpu.memory_space<vmem>>, %arg5: memref<1x128xf32, #tpu.memory_space<vmem>>, %arg6: memref<32x128xf32, #tpu.memory_space<vmem>>, %arg7: memref<32x128xf32, #tpu.memory_space<vmem>>) attributes {dimension_semantics = [#tpu.dimension_semantics<parallel>, #tpu.dimension_semantics<parallel>, #tpu.dimension_semantics<arbitrary>], iteration_bounds = array<i64: 1, 1, 1>, scalar_prefetch = 0 : i64, scratch_operands = 1 : i64, tpu.core_type = #tpu.core_type<tc>, window_params = [{transform_indices = @transform_0, window_bounds = array<i64: 32, 128>}, {transform_indices = @transform_1, window_bounds = array<i64: 128, 128>}, {transform_indices = @transform_2, window_bounds = array<i64: 1, 128>}, {transform_indices = @transform_3, window_bounds = array<i64: 32, 128>}]} {
    %c0_i32 = arith.constant 0 : i32
    %0 = arith.cmpi eq, %arg2, %c0_i32 : i32
    %1 = arith.extui %0 : i1 to i32
    %c0_i32_0 = arith.constant 0 : i32
    %2 = arith.cmpi ne, %1, %c0_i32_0 : i32
    scf.if %2 {
      %cst_10 = arith.constant 0.000000e+00 : f32
      %12 = vector.broadcast %cst_10 : f32 to vector<32x128xf32>
      %c0_11 = arith.constant 0 : index
      %c0_12 = arith.constant 0 : index
      %13 = vector.load %arg7[%c0_11, %c0_12] : memref<32x128xf32, #tpu.memory_space<vmem>>, vector<32x128xf32>
      tpu.vector_store %arg7[%c0_11, %c0_12], %12 {strides = array<i32>} : memref<32x128xf32, #tpu.memory_space<vmem>>, vector<32x128xf32>,
    } else {
    }
    %c0 = arith.constant 0 : index
    %c0_1 = arith.constant 0 : index
    %3 = vector.load %arg7[%c0, %c0_1] : memref<32x128xf32, #tpu.memory_space<vmem>>, vector<32x128xf32>
    %c0_2 = arith.constant 0 : index
    %c0_3 = arith.constant 0 : index
    %4 = vector.load %arg3[%c0_2, %c0_3] : memref<32x128xbf16, #tpu.memory_space<vmem>>, vector<32x128xbf16>
    %c0_4 = arith.constant 0 : index
    %c0_5 = arith.constant 0 : index
    %5 = vector.load %arg4[%c0_4, %c0_5] : memref<128x128xbf16, #tpu.memory_space<vmem>>, vector<128x128xbf16>
    %cst = arith.constant dense<0.000000e+00> : vector<32x128xf32>
    %6 = tpu.matmul %4, %5, %cst {dimension_numbers = #tpu.dot_dimension_numbers<[1], [0], [0], [1], [0, 0, 1, 1], [], []>} : vector<32x128xbf16>, vector<128x128xbf16>, vector<32x128xf32> -> vector<32x128xf32>
    %7 = arith.addf %3, %6 : vector<32x128xf32>
    %c0_6 = arith.constant 0 : index
    %c0_7 = arith.constant 0 : index
    %8 = vector.load %arg7[%c0_6, %c0_7] : memref<32x128xf32, #tpu.memory_space<vmem>>, vector<32x128xf32>
    tpu.vector_store %arg7[%c0_6, %c0_7], %7 {strides = array<i32>} : memref<32x128xf32, #tpu.memory_space<vmem>>, vector<32x128xf32>,
    %c0_i32_8 = arith.constant 0 : i32
    %9 = arith.cmpi eq, %arg2, %c0_i32_8 : i32
    %10 = arith.extui %9 : i1 to i32
    %c0_i32_9 = arith.constant 0 : i32
    %11 = arith.cmpi ne, %10, %c0_i32_9 : i32
    scf.if %11 {
      %c0_10 = arith.constant 0 : index
      %c0_11 = arith.constant 0 : index
      %12 = vector.load %arg7[%c0_10, %c0_11] : memref<32x128xf32, #tpu.memory_space<vmem>>, vector<32x128xf32>
      %c0_12 = arith.constant 0 : index
      %c0_13 = arith.constant 0 : index
      %13 = vector.load %arg5[%c0_12, %c0_13] : memref<1x128xf32, #tpu.memory_space<vmem>>, vector<1x128xf32>
      %14 = vector.broadcast %13 : vector<1x128xf32> to vector<32x128xf32>
      %15 = arith.addf %12, %14 : vector<32x128xf32>
      %c0_14 = arith.constant 0 : index
      %c0_15 = arith.constant 0 : index
      %16 = vector.load %arg6[%c0_14, %c0_15] : memref<32x128xf32, #tpu.memory_space<vmem>>, vector<32x128xf32>
      tpu.vector_store %arg6[%c0_14, %c0_15], %15 {strides = array<i32>} : memref<32x128xf32, #tpu.memory_space<vmem>>, vector<32x128xf32>,
    } else {
    }
    return
  }
  func.func @transform_0(%arg0: i32, %arg1: i32, %arg2: i32) -> (i32, i32) {
    %c0_i32 = arith.constant 0 : i32
    return %arg0, %arg2 : i32, i32
  }
  func.func @transform_1(%arg0: i32, %arg1: i32, %arg2: i32) -> (i32, i32) {
    %c0_i32 = arith.constant 0 : i32
    return %arg2, %arg1 : i32, i32
  }
  func.func @transform_2(%arg0: i32, %arg1: i32, %arg2: i32) -> (i32, i32) {
    %c0_i32 = arith.constant 0 : i32
    %c0_i32_0 = arith.constant 0 : i32
    return %c0_i32, %arg1 : i32, i32
  }
  func.func @transform_3(%arg0: i32, %arg1: i32, %arg2: i32) -> (i32, i32) {
    %c0_i32 = arith.constant 0 : i32
    return %arg0, %arg1 : i32, i32
  }
}

module attributes {stable_mosaic.version = 11 : i64} {
  func.func @_attn_block_kernel(%arg0: i32, %arg1: memref<1x17x128xf32, #tpu.memory_space<vmem>>, %arg2: memref<128x384xbf16, #tpu.memory_space<vmem>>, %arg3: memref<1x384xf32, #tpu.memory_space<vmem>>, %arg4: memref<128x128xbf16, #tpu.memory_space<vmem>>, %arg5: memref<1x128xf32, #tpu.memory_space<vmem>>, %arg6: memref<1x128xf32, #tpu.memory_space<vmem>>, %arg7: memref<1x128xf32, #tpu.memory_space<vmem>>, %arg8: memref<1x17x128xf32, #tpu.memory_space<vmem>>) attributes {dimension_semantics = [#tpu.dimension_semantics<parallel>], iteration_bounds = array<i64: 2>, scalar_prefetch = 0 : i64, scratch_operands = 0 : i64, tpu.core_type = #tpu.core_type<tc>, window_params = [{transform_indices = @transform_0, window_bounds = array<i64: 1, 17, 128>}, {pipeline_mode = #tpu.pipeline_mode<synchronous>, transform_indices = @transform_1, window_bounds = array<i64: 128, 384>}, {pipeline_mode = #tpu.pipeline_mode<synchronous>, transform_indices = @transform_2, window_bounds = array<i64: 1, 384>}, {pipeline_mode = #tpu.pipeline_mode<synchronous>, transform_indices = @transform_3, window_bounds = array<i64: 128, 128>}, {pipeline_mode = #tpu.pipeline_mode<synchronous>, transform_indices = @transform_4, window_bounds = array<i64: 1, 128>}, {pipeline_mode = #tpu.pipeline_mode<synchronous>, transform_indices = @transform_5, window_bounds = array<i64: 1, 128>}, {pipeline_mode = #tpu.pipeline_mode<synchronous>, transform_indices = @transform_6, window_bounds = array<i64: 1, 128>}, {transform_indices = @transform_7, window_bounds = array<i64: 1, 17, 128>}]} {
    %c0 = arith.constant 0 : index
    %c0_0 = arith.constant 0 : index
    %c0_1 = arith.constant 0 : index
    %0 = vector.load %arg1[%c0, %c0_0, %c0_1] : memref<1x17x128xf32, #tpu.memory_space<vmem>>, vector<1x17x128xf32>
    %1 = vector.shape_cast %0 : vector<1x17x128xf32> to vector<17x128xf32>
    %2 = arith.truncf %1 : vector<17x128xf32> to vector<17x128xbf16>
    %c0_2 = arith.constant 0 : index
    %c0_3 = arith.constant 0 : index
    %3 = vector.load %arg2[%c0_2, %c0_3] : memref<128x384xbf16, #tpu.memory_space<vmem>>, vector<128x384xbf16>
    %cst = arith.constant dense<0.000000e+00> : vector<17x384xf32>
    %4 = tpu.matmul %2, %3, %cst {dimension_numbers = #tpu.dot_dimension_numbers<[1], [0], [0], [1], [0, 0, 1, 1], [], []>} : vector<17x128xbf16>, vector<128x384xbf16>, vector<17x384xf32> -> vector<17x384xf32>
    %c0_4 = arith.constant 0 : index
    %c0_5 = arith.constant 0 : index
    %5 = vector.load %arg3[%c0_4, %c0_5] : memref<1x384xf32, #tpu.memory_space<vmem>>, vector<1x384xf32>
    %6 = vector.broadcast %5 : vector<1x384xf32> to vector<17x384xf32>
    %7 = arith.addf %4, %6 : vector<17x384xf32>
    %cst_6 = arith.constant 0.000000e+00 : f32
    %8 = vector.broadcast %cst_6 : f32 to vector<17x128xf32>
    %9 = vector.extract_strided_slice %7 {offsets = [0, 0], sizes = [17, 32], strides = [1, 1]} : vector<17x384xf32> to vector<17x32xf32>
    %cst_7 = arith.constant 0.176776692 : f32
    %10 = vector.broadcast %cst_7 : f32 to vector<17x32xf32>
    %11 = arith.mulf %9, %10 : vector<17x32xf32>
    %12 = arith.truncf %11 : vector<17x32xf32> to vector<17x32xbf16>
    %13 = vector.extract_strided_slice %7 {offsets = [0, 128], sizes = [17, 32], strides = [1, 1]} : vector<17x384xf32> to vector<17x32xf32>
    %14 = arith.truncf %13 : vector<17x32xf32> to vector<17x32xbf16>
    %15 = vector.extract_strided_slice %7 {offsets = [0, 256], sizes = [17, 32], strides = [1, 1]} : vector<17x384xf32> to vector<17x32xf32>
    %16 = arith.truncf %15 : vector<17x32xf32> to vector<17x32xbf16>
    %cst_8 = arith.constant dense<0.000000e+00> : vector<17x17xf32>
    %17 = tpu.matmul %12, %14, %cst_8 {dimension_numbers = #tpu.dot_dimension_numbers<[1], [1], [0], [0], [0, 0, 1, 0], [], []>} : vector<17x32xbf16>, vector<17x32xbf16>, vector<17x17xf32> -> vector<17x17xf32>
    %cst_9 = arith.constant dense<0xFF800000> : vector<17xf32>
    %18 = vector.multi_reduction <maximumf>, %17, %cst_9 [1] : vector<17x17xf32> to vector<17xf32>
    %19 = vector.shape_cast %18 : vector<17xf32> to vector<17x1xf32>
    %20 = vector.broadcast %19 : vector<17x1xf32> to vector<17x17xf32>
    %21 = arith.subf %17, %20 : vector<17x17xf32>
    %22 = math.exp %21 : vector<17x17xf32>
    %cst_10 = arith.constant dense<0.000000e+00> : vector<17xf32>
    %23 = vector.multi_reduction <add>, %22, %cst_10 [1] : vector<17x17xf32> to vector<17xf32>
    %24 = vector.shape_cast %23 : vector<17xf32> to vector<17x1xf32>
    %25 = tpu.reciprocal %24 {approx = true} : vector<17x1xf32> -> vector<17x1xf32>
    %26 = vector.broadcast %25 : vector<17x1xf32> to vector<17x17xf32>
    %27 = arith.mulf %22, %26 : vector<17x17xf32>
    %28 = arith.truncf %27 : vector<17x17xf32> to vector<17x17xbf16>
    %cst_11 = arith.constant dense<0.000000e+00> : vector<17x32xf32>
    %29 = tpu.matmul %28, %16, %cst_11 {dimension_numbers = #tpu.dot_dimension_numbers<[1], [0], [0], [1], [0, 0, 1, 1], [], []>} : vector<17x17xbf16>, vector<17x32xbf16>, vector<17x32xf32> -> vector<17x32xf32>
    %30 = arith.truncf %29 : vector<17x32xf32> to vector<17x32xbf16>
    %c0_12 = arith.constant 0 : index
    %c0_13 = arith.constant 0 : index
    %31 = vector.load %arg4[%c0_12, %c0_13] : memref<128x128xbf16, #tpu.memory_space<vmem>>, vector<32x128xbf16>
    %cst_14 = arith.constant dense<0.000000e+00> : vector<17x128xf32>
    %32 = tpu.matmul %30, %31, %cst_14 {dimension_numbers = #tpu.dot_dimension_numbers<[1], [0], [0], [1], [0, 0, 1, 1], [], []>} : vector<17x32xbf16>, vector<32x128xbf16>, vector<17x128xf32> -> vector<17x128xf32>
    %33 = arith.addf %8, %32 : vector<17x128xf32>
    %34 = vector.extract_strided_slice %7 {offsets = [0, 32], sizes = [17, 32], strides = [1, 1]} : vector<17x384xf32> to vector<17x32xf32>
    %cst_15 = arith.constant 0.176776692 : f32
    %35 = vector.broadcast %cst_15 : f32 to vector<17x32xf32>
    %36 = arith.mulf %34, %35 : vector<17x32xf32>
    %37 = arith.truncf %36 : vector<17x32xf32> to vector<17x32xbf16>
    %38 = vector.extract_strided_slice %7 {offsets = [0, 160], sizes = [17, 32], strides = [1, 1]} : vector<17x384xf32> to vector<17x32xf32>
    %39 = arith.truncf %38 : vector<17x32xf32> to vector<17x32xbf16>
    %40 = vector.extract_strided_slice %7 {offsets = [0, 288], sizes = [17, 32], strides = [1, 1]} : vector<17x384xf32> to vector<17x32xf32>
    %41 = arith.truncf %40 : vector<17x32xf32> to vector<17x32xbf16>
    %cst_16 = arith.constant dense<0.000000e+00> : vector<17x17xf32>
    %42 = tpu.matmul %37, %39, %cst_16 {dimension_numbers = #tpu.dot_dimension_numbers<[1], [1], [0], [0], [0, 0, 1, 0], [], []>} : vector<17x32xbf16>, vector<17x32xbf16>, vector<17x17xf32> -> vector<17x17xf32>
    %cst_17 = arith.constant dense<0xFF800000> : vector<17xf32>
    %43 = vector.multi_reduction <maximumf>, %42, %cst_17 [1] : vector<17x17xf32> to vector<17xf32>
    %44 = vector.shape_cast %43 : vector<17xf32> to vector<17x1xf32>
    %45 = vector.broadcast %44 : vector<17x1xf32> to vector<17x17xf32>
    %46 = arith.subf %42, %45 : vector<17x17xf32>
    %47 = math.exp %46 : vector<17x17xf32>
    %cst_18 = arith.constant dense<0.000000e+00> : vector<17xf32>
    %48 = vector.multi_reduction <add>, %47, %cst_18 [1] : vector<17x17xf32> to vector<17xf32>
    %49 = vector.shape_cast %48 : vector<17xf32> to vector<17x1xf32>
    %50 = tpu.reciprocal %49 {approx = true} : vector<17x1xf32> -> vector<17x1xf32>
    %51 = vector.broadcast %50 : vector<17x1xf32> to vector<17x17xf32>
    %52 = arith.mulf %47, %51 : vector<17x17xf32>
    %53 = arith.truncf %52 : vector<17x17xf32> to vector<17x17xbf16>
    %cst_19 = arith.constant dense<0.000000e+00> : vector<17x32xf32>
    %54 = tpu.matmul %53, %41, %cst_19 {dimension_numbers = #tpu.dot_dimension_numbers<[1], [0], [0], [1], [0, 0, 1, 1], [], []>} : vector<17x17xbf16>, vector<17x32xbf16>, vector<17x32xf32> -> vector<17x32xf32>
    %55 = arith.truncf %54 : vector<17x32xf32> to vector<17x32xbf16>
    %c32 = arith.constant 32 : index
    %c0_20 = arith.constant 0 : index
    %56 = vector.load %arg4[%c32, %c0_20] : memref<128x128xbf16, #tpu.memory_space<vmem>>, vector<32x128xbf16>
    %cst_21 = arith.constant dense<0.000000e+00> : vector<17x128xf32>
    %57 = tpu.matmul %55, %56, %cst_21 {dimension_numbers = #tpu.dot_dimension_numbers<[1], [0], [0], [1], [0, 0, 1, 1], [], []>} : vector<17x32xbf16>, vector<32x128xbf16>, vector<17x128xf32> -> vector<17x128xf32>
    %58 = arith.addf %33, %57 : vector<17x128xf32>
    %59 = vector.extract_strided_slice %7 {offsets = [0, 64], sizes = [17, 32], strides = [1, 1]} : vector<17x384xf32> to vector<17x32xf32>
    %cst_22 = arith.constant 0.176776692 : f32
    %60 = vector.broadcast %cst_22 : f32 to vector<17x32xf32>
    %61 = arith.mulf %59, %60 : vector<17x32xf32>
    %62 = arith.truncf %61 : vector<17x32xf32> to vector<17x32xbf16>
    %63 = vector.extract_strided_slice %7 {offsets = [0, 192], sizes = [17, 32], strides = [1, 1]} : vector<17x384xf32> to vector<17x32xf32>
    %64 = arith.truncf %63 : vector<17x32xf32> to vector<17x32xbf16>
    %65 = vector.extract_strided_slice %7 {offsets = [0, 320], sizes = [17, 32], strides = [1, 1]} : vector<17x384xf32> to vector<17x32xf32>
    %66 = arith.truncf %65 : vector<17x32xf32> to vector<17x32xbf16>
    %cst_23 = arith.constant dense<0.000000e+00> : vector<17x17xf32>
    %67 = tpu.matmul %62, %64, %cst_23 {dimension_numbers = #tpu.dot_dimension_numbers<[1], [1], [0], [0], [0, 0, 1, 0], [], []>} : vector<17x32xbf16>, vector<17x32xbf16>, vector<17x17xf32> -> vector<17x17xf32>
    %cst_24 = arith.constant dense<0xFF800000> : vector<17xf32>
    %68 = vector.multi_reduction <maximumf>, %67, %cst_24 [1] : vector<17x17xf32> to vector<17xf32>
    %69 = vector.shape_cast %68 : vector<17xf32> to vector<17x1xf32>
    %70 = vector.broadcast %69 : vector<17x1xf32> to vector<17x17xf32>
    %71 = arith.subf %67, %70 : vector<17x17xf32>
    %72 = math.exp %71 : vector<17x17xf32>
    %cst_25 = arith.constant dense<0.000000e+00> : vector<17xf32>
    %73 = vector.multi_reduction <add>, %72, %cst_25 [1] : vector<17x17xf32> to vector<17xf32>
    %74 = vector.shape_cast %73 : vector<17xf32> to vector<17x1xf32>
    %75 = tpu.reciprocal %74 {approx = true} : vector<17x1xf32> -> vector<17x1xf32>
    %76 = vector.broadcast %75 : vector<17x1xf32> to vector<17x17xf32>
    %77 = arith.mulf %72, %76 : vector<17x17xf32>
    %78 = arith.truncf %77 : vector<17x17xf32> to vector<17x17xbf16>
    %cst_26 = arith.constant dense<0.000000e+00> : vector<17x32xf32>
    %79 = tpu.matmul %78, %66, %cst_26 {dimension_numbers = #tpu.dot_dimension_numbers<[1], [0], [0], [1], [0, 0, 1, 1], [], []>} : vector<17x17xbf16>, vector<17x32xbf16>, vector<17x32xf32> -> vector<17x32xf32>
    %80 = arith.truncf %79 : vector<17x32xf32> to vector<17x32xbf16>
    %c64 = arith.constant 64 : index
    %c0_27 = arith.constant 0 : index
    %81 = vector.load %arg4[%c64, %c0_27] : memref<128x128xbf16, #tpu.memory_space<vmem>>, vector<32x128xbf16>
    %cst_28 = arith.constant dense<0.000000e+00> : vector<17x128xf32>
    %82 = tpu.matmul %80, %81, %cst_28 {dimension_numbers = #tpu.dot_dimension_numbers<[1], [0], [0], [1], [0, 0, 1, 1], [], []>} : vector<17x32xbf16>, vector<32x128xbf16>, vector<17x128xf32> -> vector<17x128xf32>
    %83 = arith.addf %58, %82 : vector<17x128xf32>
    %84 = vector.extract_strided_slice %7 {offsets = [0, 96], sizes = [17, 32], strides = [1, 1]} : vector<17x384xf32> to vector<17x32xf32>
    %cst_29 = arith.constant 0.176776692 : f32
    %85 = vector.broadcast %cst_29 : f32 to vector<17x32xf32>
    %86 = arith.mulf %84, %85 : vector<17x32xf32>
    %87 = arith.truncf %86 : vector<17x32xf32> to vector<17x32xbf16>
    %88 = vector.extract_strided_slice %7 {offsets = [0, 224], sizes = [17, 32], strides = [1, 1]} : vector<17x384xf32> to vector<17x32xf32>
    %89 = arith.truncf %88 : vector<17x32xf32> to vector<17x32xbf16>
    %90 = vector.extract_strided_slice %7 {offsets = [0, 352], sizes = [17, 32], strides = [1, 1]} : vector<17x384xf32> to vector<17x32xf32>
    %91 = arith.truncf %90 : vector<17x32xf32> to vector<17x32xbf16>
    %cst_30 = arith.constant dense<0.000000e+00> : vector<17x17xf32>
    %92 = tpu.matmul %87, %89, %cst_30 {dimension_numbers = #tpu.dot_dimension_numbers<[1], [1], [0], [0], [0, 0, 1, 0], [], []>} : vector<17x32xbf16>, vector<17x32xbf16>, vector<17x17xf32> -> vector<17x17xf32>
    %cst_31 = arith.constant dense<0xFF800000> : vector<17xf32>
    %93 = vector.multi_reduction <maximumf>, %92, %cst_31 [1] : vector<17x17xf32> to vector<17xf32>
    %94 = vector.shape_cast %93 : vector<17xf32> to vector<17x1xf32>
    %95 = vector.broadcast %94 : vector<17x1xf32> to vector<17x17xf32>
    %96 = arith.subf %92, %95 : vector<17x17xf32>
    %97 = math.exp %96 : vector<17x17xf32>
    %cst_32 = arith.constant dense<0.000000e+00> : vector<17xf32>
    %98 = vector.multi_reduction <add>, %97, %cst_32 [1] : vector<17x17xf32> to vector<17xf32>
    %99 = vector.shape_cast %98 : vector<17xf32> to vector<17x1xf32>
    %100 = tpu.reciprocal %99 {approx = true} : vector<17x1xf32> -> vector<17x1xf32>
    %101 = vector.broadcast %100 : vector<17x1xf32> to vector<17x17xf32>
    %102 = arith.mulf %97, %101 : vector<17x17xf32>
    %103 = arith.truncf %102 : vector<17x17xf32> to vector<17x17xbf16>
    %cst_33 = arith.constant dense<0.000000e+00> : vector<17x32xf32>
    %104 = tpu.matmul %103, %91, %cst_33 {dimension_numbers = #tpu.dot_dimension_numbers<[1], [0], [0], [1], [0, 0, 1, 1], [], []>} : vector<17x17xbf16>, vector<17x32xbf16>, vector<17x32xf32> -> vector<17x32xf32>
    %105 = arith.truncf %104 : vector<17x32xf32> to vector<17x32xbf16>
    %c96 = arith.constant 96 : index
    %c0_34 = arith.constant 0 : index
    %106 = vector.load %arg4[%c96, %c0_34] : memref<128x128xbf16, #tpu.memory_space<vmem>>, vector<32x128xbf16>
    %cst_35 = arith.constant dense<0.000000e+00> : vector<17x128xf32>
    %107 = tpu.matmul %105, %106, %cst_35 {dimension_numbers = #tpu.dot_dimension_numbers<[1], [0], [0], [1], [0, 0, 1, 1], [], []>} : vector<17x32xbf16>, vector<32x128xbf16>, vector<17x128xf32> -> vector<17x128xf32>
    %108 = arith.addf %83, %107 : vector<17x128xf32>
    %c0_36 = arith.constant 0 : index
    %c0_37 = arith.constant 0 : index
    %109 = vector.load %arg5[%c0_36, %c0_37] : memref<1x128xf32, #tpu.memory_space<vmem>>, vector<1x128xf32>
    %110 = vector.broadcast %109 : vector<1x128xf32> to vector<17x128xf32>
    %111 = arith.addf %108, %110 : vector<17x128xf32>
    %112 = arith.addf %1, %111 : vector<17x128xf32>
    %c0_38 = arith.constant 0 : index
    %c0_39 = arith.constant 0 : index
    %113 = vector.load %arg6[%c0_38, %c0_39] : memref<1x128xf32, #tpu.memory_space<vmem>>, vector<1x128xf32>
    %c0_40 = arith.constant 0 : index
    %c0_41 = arith.constant 0 : index
    %114 = vector.load %arg7[%c0_40, %c0_41] : memref<1x128xf32, #tpu.memory_space<vmem>>, vector<1x128xf32>
    %cst_42 = arith.constant dense<0.000000e+00> : vector<17xf32>
    %115 = vector.multi_reduction <add>, %112, %cst_42 [1] : vector<17x128xf32> to vector<17xf32>
    %116 = vector.shape_cast %115 : vector<17xf32> to vector<17x1xf32>
    %cst_43 = arith.constant 1.280000e+02 : f32
    %117 = vector.broadcast %cst_43 : f32 to vector<17x1xf32>
    %118 = arith.divf %116, %117 : vector<17x1xf32>
    %119 = vector.broadcast %118 : vector<17x1xf32> to vector<17x128xf32>
    %120 = arith.subf %112, %119 : vector<17x128xf32>
    %121 = arith.mulf %120, %120 : vector<17x128xf32>
    %cst_44 = arith.constant dense<0.000000e+00> : vector<17xf32>
    %122 = vector.multi_reduction <add>, %121, %cst_44 [1] : vector<17x128xf32> to vector<17xf32>
    %123 = vector.shape_cast %122 : vector<17xf32> to vector<17x1xf32>
    %cst_45 = arith.constant 1.280000e+02 : f32
    %124 = vector.broadcast %cst_45 : f32 to vector<17x1xf32>
    %125 = arith.divf %123, %124 : vector<17x1xf32>
    %126 = vector.broadcast %118 : vector<17x1xf32> to vector<17x128xf32>
    %127 = arith.subf %112, %126 : vector<17x128xf32>
    %cst_46 = arith.constant 9.99999974E-6 : f32
    %128 = vector.broadcast %cst_46 : f32 to vector<17x1xf32>
    %129 = arith.addf %125, %128 : vector<17x1xf32>
    %130 = math.rsqrt %129 : vector<17x1xf32>
    %131 = vector.broadcast %130 : vector<17x1xf32> to vector<17x128xf32>
    %132 = arith.mulf %127, %131 : vector<17x128xf32>
    %133 = vector.broadcast %113 : vector<1x128xf32> to vector<17x128xf32>
    %134 = arith.mulf %132, %133 : vector<17x128xf32>
    %135 = vector.broadcast %114 : vector<1x128xf32> to vector<17x128xf32>
    %136 = arith.addf %134, %135 : vector<17x128xf32>
    %c0_47 = arith.constant 0 : index
    %c0_48 = arith.constant 0 : index
    %c0_49 = arith.constant 0 : index
    %137 = vector.load %arg8[%c0_47, %c0_48, %c0_49] : memref<1x17x128xf32, #tpu.memory_space<vmem>>, vector<1x17x128xf32>
    %138 = vector.shape_cast %137 : vector<1x17x128xf32> to vector<17x128xf32>
    %139 = vector.shape_cast %136 : vector<17x128xf32> to vector<1x17x128xf32>
    tpu.vector_store %arg8[%c0_47, %c0_48, %c0_49], %139 {strides = array<i32>} : memref<1x17x128xf32, #tpu.memory_space<vmem>>, vector<1x17x128xf32>,
    return
  }
  func.func @transform_0(%arg0: i32) -> (i32, i32, i32) {
    %c0_i32 = arith.constant 0 : i32
    %c0_i32_0 = arith.constant 0 : i32
    %c0_i32_1 = arith.constant 0 : i32
    return %arg0, %c0_i32, %c0_i32_0 : i32, i32, i32
  }
  func.func @transform_1(%arg0: i32) -> (i32, i32) {
    %c0_i32 = arith.constant 0 : i32
    %c0_i32_0 = arith.constant 0 : i32
    %c0_i32_1 = arith.constant 0 : i32
    return %c0_i32, %c0_i32_0 : i32, i32
  }
  func.func @transform_2(%arg0: i32) -> (i32, i32) {
    %c0_i32 = arith.constant 0 : i32
    %c0_i32_0 = arith.constant 0 : i32
    %c0_i32_1 = arith.constant 0 : i32
    return %c0_i32, %c0_i32_0 : i32, i32
  }
  func.func @transform_3(%arg0: i32) -> (i32, i32) {
    %c0_i32 = arith.constant 0 : i32
    %c0_i32_0 = arith.constant 0 : i32
    %c0_i32_1 = arith.constant 0 : i32
    return %c0_i32, %c0_i32_0 : i32, i32
  }
  func.func @transform_4(%arg0: i32) -> (i32, i32) {
    %c0_i32 = arith.constant 0 : i32
    %c0_i32_0 = arith.constant 0 : i32
    %c0_i32_1 = arith.constant 0 : i32
    return %c0_i32, %c0_i32_0 : i32, i32
  }
  func.func @transform_5(%arg0: i32) -> (i32, i32) {
    %c0_i32 = arith.constant 0 : i32
    %c0_i32_0 = arith.constant 0 : i32
    %c0_i32_1 = arith.constant 0 : i32
    return %c0_i32, %c0_i32_0 : i32, i32
  }
  func.func @transform_6(%arg0: i32) -> (i32, i32) {
    %c0_i32 = arith.constant 0 : i32
    %c0_i32_0 = arith.constant 0 : i32
    %c0_i32_1 = arith.constant 0 : i32
    return %c0_i32, %c0_i32_0 : i32, i32
  }
  func.func @transform_7(%arg0: i32) -> (i32, i32, i32) {
    %c0_i32 = arith.constant 0 : i32
    %c0_i32_0 = arith.constant 0 : i32
    %c0_i32_1 = arith.constant 0 : i32
    return %arg0, %c0_i32, %c0_i32_0 : i32, i32, i32
  }
}

module attributes {stable_mosaic.version = 11 : i64} {
  func.func @_pool_fc_kernel(%arg0: i32, %arg1: memref<2x17x128xf32, #tpu.memory_space<vmem>>, %arg2: memref<128x128xbf16, #tpu.memory_space<vmem>>, %arg3: memref<1x128xf32, #tpu.memory_space<vmem>>, %arg4: memref<2x128xf32, #tpu.memory_space<vmem>>) attributes {dimension_semantics = [#tpu.dimension_semantics<arbitrary>], iteration_bounds = array<i64: 1>, scalar_prefetch = 0 : i64, scratch_operands = 0 : i64, tpu.core_type = #tpu.core_type<tc>, window_params = [{pipeline_mode = #tpu.pipeline_mode<synchronous>, transform_indices = @transform_0, window_bounds = array<i64: 2, 17, 128>}, {pipeline_mode = #tpu.pipeline_mode<synchronous>, transform_indices = @transform_1, window_bounds = array<i64: 128, 128>}, {pipeline_mode = #tpu.pipeline_mode<synchronous>, transform_indices = @transform_2, window_bounds = array<i64: 1, 128>}, {pipeline_mode = #tpu.pipeline_mode<synchronous>, transform_indices = @transform_3, window_bounds = array<i64: 2, 128>}]} {
    %c0 = arith.constant 0 : index
    %c0_0 = arith.constant 0 : index
    %c0_1 = arith.constant 0 : index
    %0 = vector.load %arg1[%c0, %c0_0, %c0_1] : memref<2x17x128xf32, #tpu.memory_space<vmem>>, vector<2x17x128xf32>
    %cst = arith.constant dense<0.000000e+00> : vector<2x128xf32>
    %1 = vector.multi_reduction <add>, %0, %cst [1] : vector<2x17x128xf32> to vector<2x128xf32>
    %cst_2 = arith.constant 1.700000e+01 : f32
    %2 = vector.broadcast %cst_2 : f32 to vector<2x128xf32>
    %3 = arith.divf %1, %2 : vector<2x128xf32>
    %4 = arith.truncf %3 : vector<2x128xf32> to vector<2x128xbf16>
    %c0_3 = arith.constant 0 : index
    %c0_4 = arith.constant 0 : index
    %5 = vector.load %arg2[%c0_3, %c0_4] : memref<128x128xbf16, #tpu.memory_space<vmem>>, vector<128x128xbf16>
    %cst_5 = arith.constant dense<0.000000e+00> : vector<2x128xf32>
    %6 = tpu.matmul %4, %5, %cst_5 {dimension_numbers = #tpu.dot_dimension_numbers<[1], [0], [0], [1], [0, 0, 1, 1], [], []>} : vector<2x128xbf16>, vector<128x128xbf16>, vector<2x128xf32> -> vector<2x128xf32>
    %c0_6 = arith.constant 0 : index
    %c0_7 = arith.constant 0 : index
    %7 = vector.load %arg3[%c0_6, %c0_7] : memref<1x128xf32, #tpu.memory_space<vmem>>, vector<1x128xf32>
    %8 = vector.broadcast %7 : vector<1x128xf32> to vector<2x128xf32>
    %9 = arith.addf %6, %8 : vector<2x128xf32>
    %c0_8 = arith.constant 0 : index
    %c0_9 = arith.constant 0 : index
    %10 = vector.load %arg4[%c0_8, %c0_9] : memref<2x128xf32, #tpu.memory_space<vmem>>, vector<2x128xf32>
    tpu.vector_store %arg4[%c0_8, %c0_9], %9 {strides = array<i32>} : memref<2x128xf32, #tpu.memory_space<vmem>>, vector<2x128xf32>,
    return
  }
  func.func @transform_0(%arg0: i32) -> (i32, i32, i32) {
    %c0_i32 = arith.constant 0 : i32
    %c0_i32_0 = arith.constant 0 : i32
    %c0_i32_1 = arith.constant 0 : i32
    %c0_i32_2 = arith.constant 0 : i32
    return %c0_i32, %c0_i32_0, %c0_i32_1 : i32, i32, i32
  }
  func.func @transform_1(%arg0: i32) -> (i32, i32) {
    %c0_i32 = arith.constant 0 : i32
    %c0_i32_0 = arith.constant 0 : i32
    %c0_i32_1 = arith.constant 0 : i32
    return %c0_i32, %c0_i32_0 : i32, i32
  }
  func.func @transform_2(%arg0: i32) -> (i32, i32) {
    %c0_i32 = arith.constant 0 : i32
    %c0_i32_0 = arith.constant 0 : i32
    %c0_i32_1 = arith.constant 0 : i32
    return %c0_i32, %c0_i32_0 : i32, i32
  }
  func.func @transform_3(%arg0: i32) -> (i32, i32) {
    %c0_i32 = arith.constant 0 : i32
    %c0_i32_0 = arith.constant 0 : i32
    %c0_i32_1 = arith.constant 0 : i32
    return %c0_i32, %c0_i32_0 : i32, i32
  }
}

module attributes {stable_mosaic.version = 11 : i64} {
  func.func @_mlp_block_kernel(%arg0: i32, %arg1: memref<1x17x128xf32, #tpu.memory_space<vmem>>, %arg2: memref<128x256xbf16, #tpu.memory_space<vmem>>, %arg3: memref<1x256xf32, #tpu.memory_space<vmem>>, %arg4: memref<256x128xbf16, #tpu.memory_space<vmem>>, %arg5: memref<1x128xf32, #tpu.memory_space<vmem>>, %arg6: memref<1x128xf32, #tpu.memory_space<vmem>>, %arg7: memref<1x128xf32, #tpu.memory_space<vmem>>, %arg8: memref<1x17x128xf32, #tpu.memory_space<vmem>>) attributes {dimension_semantics = [#tpu.dimension_semantics<parallel>], iteration_bounds = array<i64: 2>, scalar_prefetch = 0 : i64, scratch_operands = 0 : i64, tpu.core_type = #tpu.core_type<tc>, window_params = [{transform_indices = @transform_0, window_bounds = array<i64: 1, 17, 128>}, {pipeline_mode = #tpu.pipeline_mode<synchronous>, transform_indices = @transform_1, window_bounds = array<i64: 128, 256>}, {pipeline_mode = #tpu.pipeline_mode<synchronous>, transform_indices = @transform_2, window_bounds = array<i64: 1, 256>}, {pipeline_mode = #tpu.pipeline_mode<synchronous>, transform_indices = @transform_3, window_bounds = array<i64: 256, 128>}, {pipeline_mode = #tpu.pipeline_mode<synchronous>, transform_indices = @transform_4, window_bounds = array<i64: 1, 128>}, {pipeline_mode = #tpu.pipeline_mode<synchronous>, transform_indices = @transform_5, window_bounds = array<i64: 1, 128>}, {pipeline_mode = #tpu.pipeline_mode<synchronous>, transform_indices = @transform_6, window_bounds = array<i64: 1, 128>}, {transform_indices = @transform_7, window_bounds = array<i64: 1, 17, 128>}]} {
    %c0 = arith.constant 0 : index
    %c0_0 = arith.constant 0 : index
    %c0_1 = arith.constant 0 : index
    %0 = vector.load %arg1[%c0, %c0_0, %c0_1] : memref<1x17x128xf32, #tpu.memory_space<vmem>>, vector<1x17x128xf32>
    %1 = vector.shape_cast %0 : vector<1x17x128xf32> to vector<17x128xf32>
    %2 = arith.truncf %1 : vector<17x128xf32> to vector<17x128xbf16>
    %c0_2 = arith.constant 0 : index
    %c0_3 = arith.constant 0 : index
    %3 = vector.load %arg2[%c0_2, %c0_3] : memref<128x256xbf16, #tpu.memory_space<vmem>>, vector<128x256xbf16>
    %cst = arith.constant dense<0.000000e+00> : vector<17x256xf32>
    %4 = tpu.matmul %2, %3, %cst {dimension_numbers = #tpu.dot_dimension_numbers<[1], [0], [0], [1], [0, 0, 1, 1], [], []>} : vector<17x128xbf16>, vector<128x256xbf16>, vector<17x256xf32> -> vector<17x256xf32>
    %c0_4 = arith.constant 0 : index
    %c0_5 = arith.constant 0 : index
    %5 = vector.load %arg3[%c0_4, %c0_5] : memref<1x256xf32, #tpu.memory_space<vmem>>, vector<1x256xf32>
    %6 = vector.broadcast %5 : vector<1x256xf32> to vector<17x256xf32>
    %7 = arith.addf %4, %6 : vector<17x256xf32>
    %cst_6 = arith.constant 0.000000e+00 : f32
    %8 = vector.broadcast %cst_6 : f32 to vector<17x256xf32>
    %9 = arith.maximumf %7, %8 : vector<17x256xf32>
    %10 = arith.truncf %9 : vector<17x256xf32> to vector<17x256xbf16>
    %c0_7 = arith.constant 0 : index
    %c0_8 = arith.constant 0 : index
    %11 = vector.load %arg4[%c0_7, %c0_8] : memref<256x128xbf16, #tpu.memory_space<vmem>>, vector<256x128xbf16>
    %cst_9 = arith.constant dense<0.000000e+00> : vector<17x128xf32>
    %12 = tpu.matmul %10, %11, %cst_9 {dimension_numbers = #tpu.dot_dimension_numbers<[1], [0], [0], [1], [0, 0, 1, 1], [], []>} : vector<17x256xbf16>, vector<256x128xbf16>, vector<17x128xf32> -> vector<17x128xf32>
    %c0_10 = arith.constant 0 : index
    %c0_11 = arith.constant 0 : index
    %13 = vector.load %arg5[%c0_10, %c0_11] : memref<1x128xf32, #tpu.memory_space<vmem>>, vector<1x128xf32>
    %14 = vector.broadcast %13 : vector<1x128xf32> to vector<17x128xf32>
    %15 = arith.addf %12, %14 : vector<17x128xf32>
    %16 = arith.addf %1, %15 : vector<17x128xf32>
    %c0_12 = arith.constant 0 : index
    %c0_13 = arith.constant 0 : index
    %17 = vector.load %arg6[%c0_12, %c0_13] : memref<1x128xf32, #tpu.memory_space<vmem>>, vector<1x128xf32>
    %c0_14 = arith.constant 0 : index
    %c0_15 = arith.constant 0 : index
    %18 = vector.load %arg7[%c0_14, %c0_15] : memref<1x128xf32, #tpu.memory_space<vmem>>, vector<1x128xf32>
    %cst_16 = arith.constant dense<0.000000e+00> : vector<17xf32>
    %19 = vector.multi_reduction <add>, %16, %cst_16 [1] : vector<17x128xf32> to vector<17xf32>
    %20 = vector.shape_cast %19 : vector<17xf32> to vector<17x1xf32>
    %cst_17 = arith.constant 1.280000e+02 : f32
    %21 = vector.broadcast %cst_17 : f32 to vector<17x1xf32>
    %22 = arith.divf %20, %21 : vector<17x1xf32>
    %23 = vector.broadcast %22 : vector<17x1xf32> to vector<17x128xf32>
    %24 = arith.subf %16, %23 : vector<17x128xf32>
    %25 = arith.mulf %24, %24 : vector<17x128xf32>
    %cst_18 = arith.constant dense<0.000000e+00> : vector<17xf32>
    %26 = vector.multi_reduction <add>, %25, %cst_18 [1] : vector<17x128xf32> to vector<17xf32>
    %27 = vector.shape_cast %26 : vector<17xf32> to vector<17x1xf32>
    %cst_19 = arith.constant 1.280000e+02 : f32
    %28 = vector.broadcast %cst_19 : f32 to vector<17x1xf32>
    %29 = arith.divf %27, %28 : vector<17x1xf32>
    %30 = vector.broadcast %22 : vector<17x1xf32> to vector<17x128xf32>
    %31 = arith.subf %16, %30 : vector<17x128xf32>
    %cst_20 = arith.constant 9.99999974E-6 : f32
    %32 = vector.broadcast %cst_20 : f32 to vector<17x1xf32>
    %33 = arith.addf %29, %32 : vector<17x1xf32>
    %34 = math.rsqrt %33 : vector<17x1xf32>
    %35 = vector.broadcast %34 : vector<17x1xf32> to vector<17x128xf32>
    %36 = arith.mulf %31, %35 : vector<17x128xf32>
    %37 = vector.broadcast %17 : vector<1x128xf32> to vector<17x128xf32>
    %38 = arith.mulf %36, %37 : vector<17x128xf32>
    %39 = vector.broadcast %18 : vector<1x128xf32> to vector<17x128xf32>
    %40 = arith.addf %38, %39 : vector<17x128xf32>
    %c0_21 = arith.constant 0 : index
    %c0_22 = arith.constant 0 : index
    %c0_23 = arith.constant 0 : index
    %41 = vector.load %arg8[%c0_21, %c0_22, %c0_23] : memref<1x17x128xf32, #tpu.memory_space<vmem>>, vector<1x17x128xf32>
    %42 = vector.shape_cast %41 : vector<1x17x128xf32> to vector<17x128xf32>
    %43 = vector.shape_cast %40 : vector<17x128xf32> to vector<1x17x128xf32>
    tpu.vector_store %arg8[%c0_21, %c0_22, %c0_23], %43 {strides = array<i32>} : memref<1x17x128xf32, #tpu.memory_space<vmem>>, vector<1x17x128xf32>,
    return
  }
  func.func @transform_0(%arg0: i32) -> (i32, i32, i32) {
    %c0_i32 = arith.constant 0 : i32
    %c0_i32_0 = arith.constant 0 : i32
    %c0_i32_1 = arith.constant 0 : i32
    return %arg0, %c0_i32, %c0_i32_0 : i32, i32, i32
  }
  func.func @transform_1(%arg0: i32) -> (i32, i32) {
    %c0_i32 = arith.constant 0 : i32
    %c0_i32_0 = arith.constant 0 : i32
    %c0_i32_1 = arith.constant 0 : i32
    return %c0_i32, %c0_i32_0 : i32, i32
  }
  func.func @transform_2(%arg0: i32) -> (i32, i32) {
    %c0_i32 = arith.constant 0 : i32
    %c0_i32_0 = arith.constant 0 : i32
    %c0_i32_1 = arith.constant 0 : i32
    return %c0_i32, %c0_i32_0 : i32, i32
  }
  func.func @transform_3(%arg0: i32) -> (i32, i32) {
    %c0_i32 = arith.constant 0 : i32
    %c0_i32_0 = arith.constant 0 : i32
    %c0_i32_1 = arith.constant 0 : i32
    return %c0_i32, %c0_i32_0 : i32, i32
  }
  func.func @transform_4(%arg0: i32) -> (i32, i32) {
    %c0_i32 = arith.constant 0 : i32
    %c0_i32_0 = arith.constant 0 : i32
    %c0_i32_1 = arith.constant 0 : i32
    return %c0_i32, %c0_i32_0 : i32, i32
  }
  func.func @transform_5(%arg0: i32) -> (i32, i32) {
    %c0_i32 = arith.constant 0 : i32
    %c0_i32_0 = arith.constant 0 : i32
    %c0_i32_1 = arith.constant 0 : i32
    return %c0_i32, %c0_i32_0 : i32, i32
  }
  func.func @transform_6(%arg0: i32) -> (i32, i32) {
    %c0_i32 = arith.constant 0 : i32
    %c0_i32_0 = arith.constant 0 : i32
    %c0_i32_1 = arith.constant 0 : i32
    return %c0_i32, %c0_i32_0 : i32, i32
  }
  func.func @transform_7(%arg0: i32) -> (i32, i32, i32) {
    %c0_i32 = arith.constant 0 : i32
    %c0_i32_0 = arith.constant 0 : i32
    %c0_i32_1 = arith.constant 0 : i32
    return %arg0, %c0_i32, %c0_i32_0 : i32, i32, i32
  }
}

</mosaic_0001>

<bundles_post_ra>
// kernel: fwd.11
= control target key start
LH: loop header
LB: loop body
LE: loop exit
PB: predicated region body
PF: predicated region fallthrough
CT: control target
= control target key end

     0   :  { %v253_v1 = vmov 0.0   ;;  %vm254_vm0 = vmmov 0   ;;  %vm23_vm1 = vcmask 1040384   ;;  %s333_s0 = inlined_call_operand.vmem [shape: f32[2,17,128], index: 0, kind: input, shape index: {}]   ;;  %s334_s1 = inlined_call_operand.vmem [shape: bf16[128,128], index: 1, kind: input, shape index: {}]   ;;  %s335_s2 = inlined_call_operand.vmem [shape: f32[1,128], index: 2, kind: input, shape index: {}]   ;;  %s336_s3 = inlined_call_operand.hbm [shape: f32[2,128], index: 3, kind: output, shape index: {}]  }
   0x1   :  { %v221_v0 = vld [vmem:[%s334_s1] sm:$0xff]   ;;  %198 = vmatprep.subr.bf16.mxu0 %v253_v1  ;;  %v222_v2 = vld [vmem:[%s334_s1 + $0x8] sm:$0xff]   ;;  %214 = vmatprep.mubr.msk.bf16.mxu0 %vm254_vm0, %v253_v1  ;;  %v223_v3 = vld [vmem:[%s334_s1 + $0x10] sm:$0xff]  }
   0x2   :  { %199 = vmatpush3.bf16.msra.mxu0 %v221_v0  ;;  %v16_v4 = vld [vmem:[%s333_s0] sm:$0xff]  ;;  %v17_v5 = vld [vmem:[%s333_s0 + $0x8] sm:$0xff]  ;;  %v18_v6 = vld [vmem:[%s333_s0 + $0x10] sm:$0x1] }
   0x3   :  { %200 = vmatprep.subr.bf16.mxu0 %v253_v1  ;;  %v19_v7 = vld [vmem:[%s333_s0 + $0x18] sm:$0xff]  ;;  %v20_v8 = vld [vmem:[%s333_s0 + $0x20] sm:$0xff]  ;;  %v21_v9 = vld [vmem:[%s333_s0 + $0x28] sm:$0x1]  ;;  %v22_v10 = vadd.f32 %v17_v5, %v16_v4  ;;  %v24_v11 = vsel %vm23_vm1, %v18_v6, 0.0 }
   0x4   :  { %v224_v12 = vld [vmem:[%s334_s1 + $0x18] sm:$0xff]   ;;  %v32_v13 = vadd.f32 %v20_v8, %v19_v7  ;;  %v33_v14 = vsel %vm23_vm1, %v21_v9, 0.0 }
   0x6   :  { %201 = vmatpush3.bf16.msra.mxu0 %v222_v2 }
   0x7   :  { %202 = vmatprep.subr.bf16.mxu0 %v253_v1 }
   0xa   :  { %203 = vmatpush3.bf16.msra.mxu0 %v223_v3 }
   0xb   :  { %8 = vsyncpa [#allocation3], 0  ;;  %204 = vmatprep.subr.bf16.mxu0 %v253_v1  ;;  %v25_v15 = vadd.f32 %v24_v11, %v22_v10  ;;  %v34_v16 = vadd.f32 %v33_v14, %v32_v13  ;;  %v225_v18 = vld [vmem:[%s334_s1 + $0x20] sm:$0xff]   ;;  %v226_v23 = vld [vmem:[%s334_s1 + $0x28] sm:$0xff]   ;;  %vm73_vm2 = vcmask 1041409   ;;  %s255_s14 = smov [#allocation2]  }
   0xc   :  { %v227_v28 = vld [vmem:[%s334_s1 + $0x30] sm:$0xff]   ;;  %v228_v33 = vld [vmem:[%s334_s1 + $0x38] sm:$0xff]   ;;  %v180_v41 = vld [vmem:[%s335_s2] ss:$0 sm:$0xff]  ;;  %s172_s15 = sshll.u32 %s255_s14, 4  ;;  %s173_s15 = int_to_ptr.vmem [resolvable:$true] %s172_s15 }
   0xd   :  { %v26_v17 = vrot.slane %v25_v15, 4  ;;  %v35_v19 = vrot.slane %v34_v16, 4  ;;  %s229_s1 = scalar_lea.vmem %s173_s15, 32  ;;  %p234_p1 = scmp.lt.s32.totalorder %s173_s15, %s173_s15 }
   0xe   :  { %205 = vmatpush3.bf16.msra.mxu0 %v224_v12  ;;  %p230_p0 = scmp.ne.s32.totalorder %s173_s15, %s229_s1  ;;  %p235_p2 = scmp.lt.s32.totalorder %s229_s1, %s229_s1 }
   0xf   :  { %206 = vmatprep.subr.bf16.mxu0 %v253_v1  ;;  %v27_v20 = vadd.f32 %v26_v17, %v25_v15  ;;  %v36_v21 = vadd.f32 %v35_v19, %v34_v16 }
  0x10   :  { %p236_p3 = por %p235_p2, %p234_p1 }
  0x11   :  { %v28_v22 = vrot.slane %v27_v20, 2  ;;  %v37_v24 = vrot.slane %v36_v21, 2 }
  0x12   :  { %207 = vmatpush3.bf16.msra.mxu0 %v225_v18  ;;  %p237_p4 = pnand %p236_p3, %p230_p0 }
  0x13   :  { %208 = vmatprep.subr.bf16.mxu0 %v253_v1  ;;  %v29_v25 = vadd.f32 %v28_v22, %v27_v20  ;;  %v38_v26 = vadd.f32 %v37_v24, %v36_v21 }
  0x15   :  { %v30_v27 = vrot.slane %v29_v25, 1  ;;  %v39_v29 = vrot.slane %v38_v26, 1 }
  0x16   :  { %209 = vmatpush3.bf16.msra.mxu0 %v226_v23 }
  0x17   :  { %210 = vmatprep.subr.bf16.mxu0 %v253_v1  ;;  %v31_v30 = vadd.f32 %v30_v27, %v29_v25  ;;  %v40_v31 = vadd.f32 %v39_v29, %v38_v26 }
  0x19   :  { %v42_v32 = vmul.f32 0.05882353, %v31_v30  ;;  %v43_v34 = vmul.f32 0.05882353, %v40_v31 }
  0x1a   :  { %211 = vmatpush3.bf16.msra.mxu0 %v227_v28 }
  0x1b   :  { %212 = vmatprep.subr.bf16.mxu0 %v253_v1  ;;  %v44_v35 = vpack.c.bf16 %v42_v32, %v42_v32  ;;  %v45_v36 = vpack.c.bf16 %v43_v34, %v43_v34 }
  0x1d   :  { %v71_v37 = vunpack.c.l.b16 %v44_v35  ;;  %v72_v38 = vunpack.c.l.b16 %v45_v36 }
  0x1e   :  { %213 = vmatpush3.bf16.msra.mxu0 %v228_v33 }
  0x1f   :  { %v74_v39 = vsel %vm73_vm2, %v72_v38, %v71_v37 }
  0x20   :  { %v75_v40 = vpack.c.b16 %v74_v39, %v74_v39 }
  0x22   :  { %215 = vmatmul.mubr.bf16.vlgmr.msra.gmra.mrb[0].mxu0 %v75_v40 }
  0xf5   :  { %v159_v42 = vpop.f32.mrb[0].mxu0 }
  0xf6   :  { %v160_v43 = vadd.f32 %v180_v41, %v159_v42  ;;  %v216_v44 = vpop.f32.mrb[1].mxu0 }
  0xf7   :  { %v162_v45 = vpop.f32.mrb[2].mxu0 }
  0xf8   :  { %165 = vst [vmem:[#allocation2] sm:$0x3] %v160_v43  ;;  %v217_v46 = vpop.f32.mrb[3].mxu0 }
  0xf9   :  { %240 = shalt.err (!%p237_p4)
}
  0xfa   :  { %s241_s2 = scalar_lea.hbm %s336_s3, 32 }
  0xfb   :  { %p242_p5 = scmp.ne.s32.totalorder %s336_s3, %s241_s2  ;;  %p245_p6 = scmp.lt.u32.totalorder %s241_s2, %s336_s3 }
  0xfd   :  { %p247_p7 = pnand %p245_p6, %p242_p5 }
  0xff   :  { %250 = shalt.err (!%p247_p7)
}
 0x100   :  { %175 = dma.vmem_to_hbm [thread:$0]  %s173_s15, 32, %s336_s3, [#allocation3]  }
 0x101   :  { %251 = dma.done.wait [#allocation3], 32  }
 0x102   :  { %252 = vsyncadd [#allocation3], 4294967264 }
 0x103   :  { %179 = vsyncpa [#allocation3], 1 }

// kernel: fwd.6
= control target key start
LH: loop header
LB: loop body
LE: loop exit
PB: predicated region body
PF: predicated region fallthrough
CT: control target
= control target key end

     0   :  { %s306_s1 = inlined_call_operand.vmem [shape: bf16[128,128], index: 1, kind: input, shape index: {}]   ;;  %s307_s0 = inlined_call_operand.vmem [shape: bf16[32,128], index: 0, kind: input, shape index: {}]   ;;  %s308_s2 = inlined_call_operand.vmem [shape: f32[1,128], index: 2, kind: input, shape index: {}]   ;;  %s309_s3 = inlined_call_operand.vmem [shape: f32[32,128], index: 3, kind: output, shape index: {}]  }
   0x1   :  { %v231_v0 = vld [vmem:[%s306_s1] sm:$0xff]   ;;  %v232_v1 = vld [vmem:[%s306_s1 + $0x8] sm:$0xff]   ;;  %v233_v2 = vld [vmem:[%s306_s1 + $0x10] sm:$0xff]  }
   0x2   :  { %211 = vmatprep.subr.bf16.mxu0 %v231_v0  ;;  %v234_v3 = vld [vmem:[%s306_s1 + $0x18] sm:$0xff]   ;;  %v239_v4 = vld [vmem:[%s307_s0] sm:$0xff]   ;;  %v236_v6 = vld [vmem:[%s306_s1 + $0x28] sm:$0xff]  }
   0x3   :  { %212 = vmatpush3.bf16.msra.mxu0 %v231_v0  ;;  %227 = vmatprep.mubr.bf16.mxu0 %v239_v4  ;;  %v235_v5 = vld [vmem:[%s306_s1 + $0x20] sm:$0xff]   ;;  %v237_v7 = vld [vmem:[%s306_s1 + $0x30] sm:$0xff]   ;;  %v238_v8 = vld [vmem:[%s306_s1 + $0x38] sm:$0xff]  }
   0x4   :  { %213 = vmatprep.subr.bf16.mxu0 %v232_v1  ;;  %v240_v9 = vld [vmem:[%s307_s0 + $0x8] sm:$0xff]   ;;  %v200_v10 = vld [vmem:[%s308_s2] ss:$0 sm:$0xff] }
   0x7   :  { %214 = vmatpush3.bf16.msra.mxu0 %v232_v1 }
   0x8   :  { %215 = vmatprep.subr.bf16.mxu0 %v233_v2 }
   0xb   :  { %216 = vmatpush3.bf16.msra.mxu0 %v233_v2 }
   0xc   :  { %217 = vmatprep.subr.bf16.mxu0 %v234_v3 }
   0xf   :  { %218 = vmatpush3.bf16.msra.mxu0 %v234_v3 }
  0x10   :  { %219 = vmatprep.subr.bf16.mxu0 %v235_v5 }
  0x13   :  { %220 = vmatpush3.bf16.msra.mxu0 %v235_v5 }
  0x14   :  { %221 = vmatprep.subr.bf16.mxu0 %v236_v6 }
  0x17   :  { %222 = vmatpush3.bf16.msra.mxu0 %v236_v6 }
  0x18   :  { %223 = vmatprep.subr.bf16.mxu0 %v237_v7 }
  0x1b   :  { %224 = vmatpush3.bf16.msra.mxu0 %v237_v7 }
  0x1c   :  { %225 = vmatprep.subr.bf16.mxu0 %v238_v8 }
  0x1f   :  { %226 = vmatpush3.bf16.msra.mxu0 %v238_v8 }
  0x22   :  { %228 = vmatmul.mubr.bf16.vlgmr.msra.gmra.mrb[0].mxu0 %v240_v9 }
  0xf5   :  { %v229_v11 = vpop.f32.mrb[0].mxu0 }
  0xf6   :  { %v180_v12 = vadd.f32 %v229_v11, %v200_v10  ;;  %v141_v13 = vpop.f32.mrb[1].mxu0 }
  0xf7   :  { %v178_v14 = vadd.f32 %v200_v10, %v141_v13  ;;  %v230_v15 = vpop.f32.mrb[2].mxu0 }
  0xf8   :  { %184 = vst [vmem:[%s309_s3 + $0x10] sm:$0xff] %v180_v12  ;;  %v181_v16 = vadd.f32 %v230_v15, %v200_v10  ;;  %v144_v17 = vpop.f32.mrb[3].mxu0 }
  0xf9   :  { %182 = vst [vmem:[%s309_s3] sm:$0xff] %v178_v14  ;;  %v179_v18 = vadd.f32 %v200_v10, %v144_v17 }
  0xfa   :  { %185 = vst [vmem:[%s309_s3 + $0x18] sm:$0xff] %v181_v16 }
  0xfb   :  { %183 = vst [vmem:[%s309_s3 + $0x8] sm:$0xff] %v179_v18 }

// kernel: fwd.8
= control target key start
LH: loop header
LB: loop body
LE: loop exit
PB: predicated region body
PF: predicated region fallthrough
CT: control target
= control target key end

     0   :  { %s932_s24 = smov 0   ;;  %s1083_s0 = inlined_call_operand.vmem [shape: f32[2,17,128], index: 0, kind: input, shape index: {}]   ;;  %s1084_s1 = inlined_call_operand.vmem [shape: bf16[128,256], index: 1, kind: input, shape index: {}]   ;;  %s1085_s2 = inlined_call_operand.vmem [shape: f32[1,256], index: 2, kind: input, shape index: {}]   ;;  %s1086_s3 = inlined_call_operand.vmem [shape: bf16[256,128], index: 3, kind: input, shape index: {}]   ;;  %s1087_s4 = inlined_call_operand.vmem [shape: f32[1,128], index: 4, kind: input, shape index: {}]   ;;  %s1088_s5 = inlined_call_operand.vmem [shape: f32[1,128], index: 5, kind: input, shape index: {}]   ;;  %s1089_s6 = inlined_call_operand.vmem [shape: f32[1,128], index: 6, kind: input, shape index: {}]   ;;  %s1090_s7 = inlined_call_operand.vmem [shape: f32[2,17,128], index: 7, kind: output, shape index: {}]  }
   0x1 LB: > { %s755_s25 = sadd.s32 4294967295, %s889_s24   ;;  %p759_p0 = scmp.ge.s32.totalorder %s889_s24, 1  ;;  %s889_s24 = sphi %s932_s24, %s17_s24  }
   0x2   : > { %p237_p1 = scmp.lt.s32.totalorder %s889_s24, 3 }
   0x4   : > { %p238_p2 = pnand %p759_p0, %p237_p1 }
   0x5   : > { %v837_v0 = vld [vmem:[%s1084_s1 + $0x4] ss:$8 sps:$4 sm:$0xff] (!%p238_p2)   ;;  %v839_v1 = vld [vmem:[%s1084_s1] ss:$8 sps:$4 sm:$0xff] (!%p238_p2)   ;;  %v891_v2 = vmov (!%p238_p2), 0   ;;  %p269_p3 = scmp.lt.s32.totalorder (!%p238_p2), %s755_s25, 1  ;;  %v303_v38 = vlaneseq (!%p238_p2) }
   0x6   : > { %241 = sbr.rel (%p238_p2) target bundleno = 808 (0x328), region = 48  ;;  %425 = vmatprep.mubr.bf16.mxu0 (!%p238_p2), %v891_v2  ;;  %393 = vmatprep.subr.bf16.mxu0 (!%p238_p2), %v837_v0  ;;  %v840_v3 = vld [vmem:[%s1084_s1 + $0x14] ss:$8 sps:$4 sm:$0xff] (!%p238_p2)   ;;  %v842_v4 = vld [vmem:[%s1084_s1 + $0x10] ss:$8 sps:$4 sm:$0xff] (!%p238_p2)   ;;  %v861_v10 = vld [vmem:[%s1086_s3 + $0x40] sm:$0xff] (!%p238_p2)  }
   0x7   : > { %394 = vmatpush1.bf16.msra.mxu0 (!%p238_p2), %v839_v1  ;;  %v843_v5 = vld [vmem:[%s1084_s1 + $0x24] ss:$8 sps:$4 sm:$0xff] (!%p238_p2)   ;;  %v845_v6 = vld [vmem:[%s1084_s1 + $0x20] ss:$8 sps:$4 sm:$0xff] (!%p238_p2)   ;;  %v846_v7 = vld [vmem:[%s1084_s1 + $0x34] ss:$8 sps:$4 sm:$0xff] (!%p238_p2)   ;;  %799 = vmatprep.subr.bf16.mxu1 (!%p238_p2), %v861_v10 }
   0x8   : > { %395 = vmatprep.subr.bf16.mxu0 (!%p238_p2), %v840_v3  ;;  %v848_v8 = vld [vmem:[%s1084_s1 + $0x30] ss:$8 sps:$4 sm:$0xff] (!%p238_p2)   ;;  %v849_v9 = vld [vmem:[%s1084_s1 + $0x44] ss:$8 sps:$4 sm:$0xff] (!%p238_p2)   ;;  %v851_v11 = vld [vmem:[%s1084_s1 + $0x40] ss:$8 sps:$4 sm:$0xff] (!%p238_p2)  }
   0x9   : > { %v862_v12 = vld [vmem:[%s1086_s3] sm:$0xff] (!%p238_p2)   ;;  %v852_v13 = vld [vmem:[%s1084_s1 + $0x54] ss:$8 sps:$4 sm:$0xff] (!%p238_p2)   ;;  %v863_v14 = vld [vmem:[%s1086_s3 + $0x48] sm:$0xff] (!%p238_p2)   ;;  %v304_v39 = vshrl.u32 (!%p238_p2), %v303_v38, 7  ;;  %vm646_vm0 = vcmask (!%p238_p2), 1040384  }
   0xa   : > { %800 = vmatpush3.bf16.msra.mxu1 (!%p238_p2), %v862_v12  ;;  %v864_v15 = vld [vmem:[%s1086_s3 + $0x8] sm:$0xff] (!%p238_p2)   ;;  %v865_v16 = vld [vmem:[%s1086_s3 + $0x50] sm:$0xff] (!%p238_p2)   ;;  %v867_v20 = vld [vmem:[%s1086_s3 + $0x58] sm:$0xff] (!%p238_p2)  }
   0xb   : > { %396 = vmatpush1.bf16.msra.mxu0 (!%p238_p2), %v842_v4  ;;  %801 = vmatprep.subr.bf16.mxu1 (!%p238_p2), %v863_v14  ;;  %v854_v17 = vld [vmem:[%s1084_s1 + $0x50] ss:$8 sps:$4 sm:$0xff] (!%p238_p2)   ;;  %v855_v18 = vld [vmem:[%s1084_s1 + $0x64] ss:$8 sps:$4 sm:$0xff] (!%p238_p2)   ;;  %v857_v21 = vld [vmem:[%s1084_s1 + $0x60] ss:$8 sps:$4 sm:$0xff] (!%p238_p2)  }
   0xc   : > { %397 = vmatprep.subr.bf16.mxu0 (!%p238_p2), %v843_v5  ;;  %v866_v19 = vld [vmem:[%s1086_s3 + $0x10] sm:$0xff] (!%p238_p2)   ;;  %v868_v23 = vld [vmem:[%s1086_s3 + $0x18] sm:$0xff] (!%p238_p2)   ;;  %v869_v24 = vld [vmem:[%s1086_s3 + $0x60] sm:$0xff] (!%p238_p2)   ;;  %v305_v40 = vsub.s32 (!%p238_p2), 0, %v304_v39  ;;  %v309_v42 = vsub.s32 (!%p238_p2), 1, %v304_v39 }
   0xd   : > { %s1092_s25 = smov (!%p269_p3, %s755_s25), 1  ;;  %v858_v22 = vld [vmem:[%s1084_s1 + $0x74] ss:$8 sps:$4 sm:$0xff]   ;;  %v860_v25 = vld [vmem:[%s1084_s1 + $0x70] ss:$8 sps:$4 sm:$0xff]   ;;  %v870_v28 = vld [vmem:[%s1086_s3 + $0x20] sm:$0xff]  }
   0xe   : > { %802 = vmatpush3.bf16.msra.mxu1 %v864_v15  ;;  %s827_s20 = smul.u32 24, %s1092_s25  ;;  %v871_v29 = vld [vmem:[%s1086_s3 + $0x68] sm:$0xff]   ;;  %v873_v34 = vld [vmem:[%s1086_s3 + $0x70] sm:$0xff]   ;;  %v875_v36 = vld [vmem:[%s1086_s3 + $0x78] sm:$0xff]  }
   0xf   : > { %398 = vmatpush1.bf16.msra.mxu0 %v845_v6  ;;  %803 = vmatprep.subr.bf16.mxu1 %v865_v16  ;;  %v872_v33 = vld [vmem:[%s1086_s3 + $0x28] sm:$0xff]   ;;  %v874_v35 = vld [vmem:[%s1086_s3 + $0x30] sm:$0xff]   ;;  %v876_v37 = vld [vmem:[%s1086_s3 + $0x38] sm:$0xff]  }
  0x10   : > { %399 = vmatprep.subr.bf16.mxu0 %v846_v7  ;;  %s273_s12 = scalar_lea.vmem %s1083_s0, %s827_s20  ;;  %v301_v41 = vld [vmem:[%s1085_s2] sm:$0x3]  ;;  %s278_s19 = scalar_lea.vmem %s1090_s7, %s827_s20 }
  0x11   : > { %v1027_v26 = vld [vmem:[%s273_s12] sm:$0xff]  ;;  %v1029_v27 = vld [vmem:[%s273_s12 + $0x8] sm:$0xff]  ;;  %v1039_v31 = vld [vmem:[%s273_s12 + $0x10] sm:$0x1]  ;;  %v306_v43 = vrot.slane %v301_v41, %v305_v40  ;;  %v310_v44 = vrot.slane %v301_v41, %v309_v42 }
  0x12   : > { %804 = vmatpush3.bf16.msra.mxu1 %v866_v19  ;;  %v283_v30 = vpack.c.bf16 %v1029_v27, %v1027_v26  ;;  %v284_v32 = vpack.c.bf16 %v1039_v31, %v1039_v31 }
  0x13   : > { %400 = vmatpush1.bf16.msra.mxu0 %v848_v8  ;;  %805 = vmatprep.subr.bf16.mxu1 %v867_v20 }
  0x14   : > { %401 = vmatprep.subr.bf16.mxu0 %v849_v9 }
  0x16   : > { %806 = vmatpush3.bf16.msra.mxu1 %v868_v23 }
  0x17   : > { %402 = vmatpush1.bf16.msra.mxu0 %v851_v11  ;;  %807 = vmatprep.subr.bf16.mxu1 %v869_v24  ;;  %v778_v11 = vld [vmem:[%s1087_s4] ss:$0 sm:$0xff] }
  0x18   : > { %403 = vmatprep.subr.bf16.mxu0 %v852_v13 }
  0x1a   : > { %808 = vmatpush3.bf16.msra.mxu1 %v870_v28 }
  0x1b   : > { %404 = vmatpush1.bf16.msra.mxu0 %v854_v17  ;;  %809 = vmatprep.subr.bf16.mxu1 %v871_v29 }
  0x1c   : > { %405 = vmatprep.subr.bf16.mxu0 %v855_v18 }
  0x1e   : > { %810 = vmatpush3.bf16.msra.mxu1 %v872_v33 }
  0x1f   : > { %406 = vmatpush1.bf16.msra.mxu0 %v857_v21  ;;  %811 = vmatprep.subr.bf16.mxu1 %v873_v34 }
  0x20   : > { %407 = vmatprep.subr.bf16.mxu0 %v858_v22 }
  0x22   : > { %812 = vmatpush3.bf16.msra.mxu1 %v874_v35 }
  0x23   : > { %408 = vmatpush1.bf16.msra.mxu0 %v860_v25  ;;  %813 = vmatprep.subr.bf16.mxu1 %v875_v36 }
  0x26   : > { %426 = vmatmul.mubr.bf16.vlgmr.msra.gmra.mrb[0].mxu0 %v283_v30  ;;  %814 = vmatpush3.bf16.msra.mxu1 %v876_v37 }
  0x27   : > { %435 = vmatprep.mubr.bf16.mxu0 %v891_v2 }
  0x2e   : > { %436 = vmatmul.mubr.bf16.gmra.mrb[4].mxu0 %v284_v32 }
  0xf9   : > { %v427_v45 = vpop.f32.mrb[0].mxu0 }
  0xfa   : > { %v428_v46 = vadd.f32 %v427_v45, %v306_v43  ;;  %v429_v47 = vpop.f32.mrb[1].mxu0 }
  0xfb   : > { %v430_v48 = vadd.f32 %v429_v47, %v310_v44  ;;  %v431_v49 = vpop.f32.mrb[2].mxu0 }
  0xfc   : > { %v432_v50 = vadd.f32 %v431_v49, %v306_v43  ;;  %v433_v51 = vpop.f32.mrb[3].mxu0  ;;  %v444_v53 = vmax.f32 %v428_v46, 0.0 }
  0xfd   : > { %v434_v52 = vadd.f32 %v433_v51, %v310_v44  ;;  %v445_v55 = vmax.f32 %v430_v48, 0.0  ;;  %v796_v48 = vld [vmem:[%s1089_s6] ss:$0 sm:$0xff] }
  0xfe   : > { %v446_v54 = vmax.f32 %v432_v50, 0.0 }
  0xff   : > { %v447_v56 = vmax.f32 %v434_v52, 0.0 }
 0x100   : > { %v450_v57 = vpack.c.bf16 %v446_v54, %v444_v53 }
 0x101   : > { %v437_v58 = vpop.f32.mrb[4].mxu0  ;;  %v451_v59 = vpack.c.bf16 %v447_v56, %v445_v55 }
 0x102   : > { %v438_v60 = vadd.f32 %v437_v58, %v306_v43  ;;  %v439_v61 = vpop.f32.mrb[5].mxu0 }
 0x103   : > { %v440_v62 = vadd.f32 %v439_v61, %v310_v44  ;;  %v441_v63 = vpop.f32.mrb[6].mxu0  ;;  %621 = vmatprep.mubr.bf16.mxu1 %v451_v59  ;;  %v795_v44 = vld [vmem:[%s1088_s5] ss:$0 sm:$0xff] }
 0x104   : > { %v442_v0 = vpop.f32.mrb[7].mxu0  ;;  %622 = vmatmul.mubr.bf16.vlgmr.msra.gmra.mrb[0].mxu1 %v450_v57  ;;  %v448_v2 = vmax.f32 %v438_v60, 0.0 }
 0x105   : > { %v449_v1 = vmax.f32 %v440_v62, 0.0 }
 0x106   : > { %v452_v4 = vpack.c.bf16 %v448_v2, %v448_v2 }
 0x107   : > { %v453_v3 = vpack.c.bf16 %v449_v1, %v449_v1 }
 0x109   : > { %629 = vmatprep.mubr.bf16.mxu1 %v453_v3 }
 0x10c   : > { %630 = vmatmul.mubr.bf16.gmra.mrb[4].mxu1 %v452_v4 }
 0x1d7   : > { %v815_v5 = vpop.f32.mrb[0].mxu1 }
 0x1d8   : > { %v816_v6 = vpop.f32.mrb[1].mxu1 }
 0x1d9   : > { %v817_v7 = vadd.f32 %v816_v6, %v815_v5  ;;  %v818_v8 = vpop.f32.mrb[2].mxu1 }
 0x1da   : > { %v819_v9 = vpop.f32.mrb[3].mxu1 }
 0x1db   : > { %v820_v10 = vadd.f32 %v819_v9, %v818_v8  ;;  %v624_v21 = vadd.f32 %v817_v7, %v778_v11 }
 0x1dd   : > { %v627_v12 = vadd.f32 %v820_v10, %v778_v11  ;;  %v637_v23 = vadd.f32 %v624_v21, %v1027_v26 }
 0x1df   : > { %v821_v13 = vpop.f32.mrb[4].mxu1  ;;  %v638_v14 = vadd.f32 %v627_v12, %v1029_v27 }
 0x1e0   : > { %v822_v15 = vpop.f32.mrb[5].mxu1 }
 0x1e1   : > { %v823_v16 = vadd.f32 %v822_v15, %v821_v13  ;;  %v824_v17 = vpop.f32.mrb[6].mxu1  ;;  %644 = vadd.xlane.f32.xlu1 %v638_v14 }
 0x1e2   : > { %v825_v18 = vpop.f32.mrb[7].mxu1 }
 0x1e3   : > { %v632_v19 = vadd.f32 %v823_v16, %v778_v11 }
 0x1e5   : > { %v639_v20 = vadd.f32 %v632_v19, %v1039_v31 }
 0x1e7   : > { %v647_v22 = vsel %vm646_vm0, %v639_v20, 0.0 }
 0x1e8   : > { %648 = vadd.xlane.f32.xlu0 %v647_v22 }
 0x1ec   : > { %642 = vadd.xlane.f32.xlu0 %v637_v23 }
 0x26e   : > { %v645_v24 = vpop.xlane.xlu1 %644 }
 0x26f   : > { %v652_v25 = vmul.f32 0.0078125, %v645_v24 }
 0x271   : > { %v655_v28 = vsub.f32 %v638_v14, %v652_v25 }
 0x273   : > { %v658_v27 = vmul.f32 %v655_v28, %v655_v28 }
 0x275   : > { %v649_v29 = vpop.xlane.xlu0 %648  ;;  %662 = vadd.xlane.f32.xlu0 %v658_v27 }
 0x276   : > { %v653_v30 = vmul.f32 0.0078125, %v649_v29 }
 0x278   : > { %v656_v34 = vsub.f32 %v639_v20, %v653_v30 }
 0x279   : > { %v643_v32 = vpop.xlane.xlu0 %642 }
 0x27a   : > { %v651_v33 = vmul.f32 0.0078125, %v643_v32  ;;  %v659_v31 = vmul.f32 %v656_v34, %v656_v34 }
 0x27c   : > { %v654_v35 = vsub.f32 %v637_v23, %v651_v33  ;;  %v664_v37 = vsel %vm646_vm0, %v659_v31, 0.0 }
 0x27e   : > { %v657_v36 = vmul.f32 %v654_v35, %v654_v35 }
 0x280   : > { %660 = vadd.xlane.f32.xlu1 %v657_v36 }
 0x284   : > { %665 = vadd.xlane.f32.xlu1 %v664_v37 }
 0x302   : > { %v663_v38 = vpop.xlane.xlu0 %662 }
 0x303   : > { %v668_v26 = vmul.f32 0.0078125, %v663_v38 }
 0x305   : > { %v671_v39 = vadd.f32 1e-05, %v668_v26 }
 0x307   : > { %877 = vrsqrt.f32 %v671_v39 }
 0x30d   : > { %v661_v40 = vpop.xlane.xlu1 %660 }
 0x30e   : > { %v667_v41 = vmul.f32 0.0078125, %v661_v40 }
 0x310   : > { %v670_v42 = vadd.f32 1e-05, %v667_v41 }
 0x311   : > { %v878_v43 = vpop.eup %877  ;;  %v666_v45 = vpop.xlane.xlu1 %665 }
 0x312   : > { %v677_v46 = vmul.f32 %v878_v43, %v655_v28  ;;  %879 = vrsqrt.f32 %v670_v42  ;;  %v669_v47 = vmul.f32 0.0078125, %v666_v45 }
 0x314   : > { %v686_v49 = vmul.f32 %v795_v44, %v677_v46  ;;  %v672_v50 = vadd.f32 1e-05, %v669_v47 }
 0x316   : > { %v695_v51 = vadd.f32 %v796_v48, %v686_v49  ;;  %881 = vrsqrt.f32 %v672_v50 }
 0x318   : > { %698 = vst [vmem:[%s278_s19 + $0x8] sm:$0xff] %v695_v51 }
 0x31c   : > { %v880_v52 = vpop.eup %879 }
 0x31d   : > { %v676_v53 = vmul.f32 %v880_v52, %v654_v35 }
 0x31f   : > { %v685_v54 = vmul.f32 %v795_v44, %v676_v53 }
 0x320   : > { %v882_v55 = vpop.eup %881 }
 0x321   : > { %v694_v56 = vadd.f32 %v796_v48, %v685_v54  ;;  %v678_v57 = vmul.f32 %v882_v55, %v656_v34 }
 0x323   : > { %697 = vst [vmem:[%s278_s19] sm:$0xff] %v694_v56  ;;  %v687_v58 = vmul.f32 %v795_v44, %v678_v57 }
 0x325   : > { %v696_v59 = vadd.f32 %v796_v48, %v687_v58 }
 0x327   : > { %699 = vst [vmem:[%s278_s19 + $0x10] sm:$0x1] %v696_v59 }
 0x328 PF: > { %s17_s24 = sadd.s32 1, %s889_s24  }
 0x329   : > { %p14_p4 = scmp.ge.s32.totalorder %s17_s24, 4  }
 0x32b   :  { %16 = sbr.rel (!%p14_p4) target bundleno = 1 (0x1), region = 78 }

// kernel: fwd.7
= control target key start
LH: loop header
LB: loop body
LE: loop exit
PB: predicated region body
PF: predicated region fallthrough
CT: control target
= control target key end

     0   :  { %s2059_s24 = smov 0   ;;  %s2373_s0 = inlined_call_operand.vmem [shape: f32[2,17,128], index: 0, kind: input, shape index: {}]   ;;  %s2374_s1 = inlined_call_operand.vmem [shape: bf16[128,384], index: 1, kind: input, shape index: {}]   ;;  %s2375_s2 = inlined_call_operand.vmem [shape: f32[1,384], index: 2, kind: input, shape index: {}]   ;;  %s2376_s3 = inlined_call_operand.vmem [shape: bf16[128,128], index: 3, kind: input, shape index: {}]   ;;  %s2377_s4 = inlined_call_operand.vmem [shape: f32[1,128], index: 4, kind: input, shape index: {}]   ;;  %s2378_s5 = inlined_call_operand.vmem [shape: f32[1,128], index: 5, kind: input, shape index: {}]   ;;  %s2379_s6 = inlined_call_operand.vmem [shape: f32[1,128], index: 6, kind: input, shape index: {}]   ;;  %s2380_s7 = inlined_call_operand.vmem [shape: f32[2,17,128], index: 7, kind: output, shape index: {}]  }
   0x1 LB: > { %s1650_s25 = sadd.s32 4294967295, %s2013_s24   ;;  %p1654_p0 = scmp.ge.s32.totalorder %s2013_s24, 1  ;;  %s2013_s24 = sphi %s2059_s24, %s17_s24  }
   0x2   : > { %p237_p1 = scmp.lt.s32.totalorder %s2013_s24, 3 }
   0x4   : > { %p238_p2 = pnand %p1654_p0, %p237_p1 }
   0x5   : > { %v1913_v0 = vld [vmem:[%s2374_s1 + $0x4] ss:$12 sps:$4 sm:$0xff] (!%p238_p2)   ;;  %v1915_v1 = vld [vmem:[%s2374_s1] ss:$12 sps:$4 sm:$0xff] (!%p238_p2)   ;;  %v2015_v2 = vmov (!%p238_p2), 0   ;;  %p269_p3 = scmp.lt.s32.totalorder (!%p238_p2), %s1650_s25, 1  ;;  %v319_v22 = vlaneseq (!%p238_p2) }
   0x6   : > { %241 = sbr.rel (%p238_p2) target bundleno = 3106 (0xc22), region = 48  ;;  %494 = vmatprep.mubr.bf16.mxu0 (!%p238_p2), %v2015_v2  ;;  %462 = vmatprep.subr.bf16.mxu0 (!%p238_p2), %v1913_v0  ;;  %v1916_v3 = vld [vmem:[%s2374_s1 + $0x1c] ss:$12 sps:$4 sm:$0xff] (!%p238_p2)   ;;  %v1918_v4 = vld [vmem:[%s2374_s1 + $0x18] ss:$12 sps:$4 sm:$0xff] (!%p238_p2)   ;;  %vm570_vm0 = vcmask (!%p238_p2), 261120  }
   0x7   : > { %463 = vmatpush1.bf16.msra.mxu0 (!%p238_p2), %v1915_v1  ;;  %v1919_v5 = vld [vmem:[%s2374_s1 + $0x34] ss:$12 sps:$4 sm:$0xff] (!%p238_p2)   ;;  %v1921_v6 = vld [vmem:[%s2374_s1 + $0x30] ss:$12 sps:$4 sm:$0xff] (!%p238_p2)   ;;  %v1922_v7 = vld [vmem:[%s2374_s1 + $0x4c] ss:$12 sps:$4 sm:$0xff] (!%p238_p2)  }
   0x8   : > { %464 = vmatprep.subr.bf16.mxu0 (!%p238_p2), %v1916_v3  ;;  %v1924_v9 = vld [vmem:[%s2374_s1 + $0x48] ss:$12 sps:$4 sm:$0xff] (!%p238_p2)   ;;  %v1925_v10 = vld [vmem:[%s2374_s1 + $0x64] ss:$12 sps:$4 sm:$0xff] (!%p238_p2)   ;;  %v1927_v13 = vld [vmem:[%s2374_s1 + $0x60] ss:$12 sps:$4 sm:$0xff] (!%p238_p2)  }
   0x9   : > { %v1928_v14 = vld [vmem:[%s2374_s1 + $0x7c] ss:$12 sps:$4 sm:$0xff] (!%p238_p2)   ;;  %v1930_v15 = vld [vmem:[%s2374_s1 + $0x78] ss:$12 sps:$4 sm:$0xff] (!%p238_p2)   ;;  %v1931_v16 = vld [vmem:[%s2374_s1 + $0x94] ss:$12 sps:$4 sm:$0xff] (!%p238_p2)  }
   0xa   : > { %v1933_v17 = vld [vmem:[%s2374_s1 + $0x90] ss:$12 sps:$4 sm:$0xff] (!%p238_p2)   ;;  %v1934_v18 = vld [vmem:[%s2374_s1 + $0xac] ss:$12 sps:$4 sm:$0xff] (!%p238_p2)   ;;  %v1936_v19 = vld [vmem:[%s2374_s1 + $0xa8] ss:$12 sps:$4 sm:$0xff] (!%p238_p2)  }
   0xb   : > { %465 = vmatpush1.bf16.msra.mxu0 (!%p238_p2), %v1918_v4  ;;  %v2135_v23 = vshrl.u32 (!%p238_p2), %v319_v22, 7  ;;  %v2141_v25 = vld [vmem:[%s2375_s2] sm:$0x7] (!%p238_p2)  ;;  %v1937_v52 = vld [vmem:[%s2374_s1 + $0x8] ss:$12 sps:$4 sm:$0xff] (!%p238_p2)   ;;  %vm638_vm1 = vcmask (!%p238_p2), 131072  }
   0xc   : > { %466 = vmatprep.subr.bf16.mxu0 (!%p238_p2), %v1919_v5  ;;  %v1938_v53 = vld [vmem:[%s2374_s1 + $0x20] ss:$12 sps:$4 sm:$0xff] (!%p238_p2)   ;;  %1776 = vmatprep.subr.bf16.mxu1 (!%p238_p2), %v1937_v52  ;;  %v1939_v54 = vld [vmem:[%s2374_s1 + $0x38] ss:$12 sps:$4 sm:$0xff] (!%p238_p2)   ;;  %v1940_v55 = vld [vmem:[%s2374_s1 + $0x50] ss:$12 sps:$4 sm:$0xff] (!%p238_p2)  }
   0xd   : > { %s2382_s25 = smov (!%p269_p3, %s1650_s25), 1  ;;  %v321_v24 = vsub.s32 0, %v2135_v23  ;;  %v325_v26 = vsub.s32 1, %v2135_v23  ;;  %1777 = vmatpush3.bf16.msra.mxu1 %v1937_v52  ;;  %v1941_v56 = vld [vmem:[%s2374_s1 + $0x68] ss:$12 sps:$4 sm:$0xff]   ;;  %vm631_vm2 = vcmask 138240  }
   0xe   : > { %s1900_s13 = smul.u32 24, %s2382_s25  ;;  %1778 = vmatprep.subr.bf16.mxu1 %v1938_v53  ;;  %v1942_v57 = vld [vmem:[%s2374_s1 + $0x80] ss:$12 sps:$4 sm:$0xff]   ;;  %v1943_v58 = vld [vmem:[%s2374_s1 + $0x98] ss:$12 sps:$4 sm:$0xff]   ;;  %v329_v4 = vsub.s32 2, %v2135_v23 }
   0xf   : > { %467 = vmatpush1.bf16.msra.mxu0 %v1921_v6  ;;  %v322_v27 = vrot.slane %v2141_v25, %v321_v24  ;;  %v326_v29 = vrot.slane %v2141_v25, %v325_v26  ;;  %v1944_v59 = vld [vmem:[%s2374_s1 + $0xb0] ss:$12 sps:$4 sm:$0xff]   ;;  %vm674_vm3 = vcmask 1040384   ;;  %s2016_s17 = smov 96   ;;  %s2017_s22 = smov 64  }
  0x10   : > { %s273_s18 = scalar_lea.vmem %s2373_s0, %s1900_s13  ;;  %468 = vmatprep.subr.bf16.mxu0 %v1922_v7  ;;  %v330_v5 = vrot.slane %v2141_v25, %v329_v4  ;;  %s2018_s23 = smov 32  }
  0x11   : > { %v2097_v8 = vld [vmem:[%s273_s18] sm:$0xff]  ;;  %v2105_v11 = vld [vmem:[%s273_s18 + $0x8] sm:$0xff]  ;;  %v2131_v20 = vld [vmem:[%s273_s18 + $0x10] sm:$0x1]  ;;  %1779 = vmatpush3.bf16.msra.mxu1 %v1938_v53  ;;  %s278_s26 = scalar_lea.vmem %s2380_s7, %s1900_s13 }
  0x12   : > { %v283_v12 = vpack.c.bf16 %v2105_v11, %v2097_v8  ;;  %v284_v21 = vpack.c.bf16 %v2131_v20, %v2131_v20  ;;  %1780 = vmatprep.subr.bf16.mxu1 %v1939_v54  ;;  %v1945_v53 = vld [vmem:[%s2376_s3] sm:$0xff]  }
  0x13   : > { %469 = vmatpush1.bf16.msra.mxu0 %v1924_v9 }
  0x14   : > { %1792 = vmatprep.mubr.bf16.mxu1 %v283_v12  ;;  %470 = vmatprep.subr.bf16.mxu0 %v1925_v10 }
  0x15   : > { %1781 = vmatpush3.bf16.msra.mxu1 %v1939_v54 }
  0x16   : > { %1782 = vmatprep.subr.bf16.mxu1 %v1940_v55 }
  0x17   : > { %471 = vmatpush1.bf16.msra.mxu0 %v1927_v13 }
  0x18   : > { %472 = vmatprep.subr.bf16.mxu0 %v1928_v14 }
  0x19   : > { %1783 = vmatpush3.bf16.msra.mxu1 %v1940_v55 }
  0x1a   : > { %1784 = vmatprep.subr.bf16.mxu1 %v1941_v56 }
  0x1b   : > { %473 = vmatpush1.bf16.msra.mxu0 %v1930_v15 }
  0x1c   : > { %474 = vmatprep.subr.bf16.mxu0 %v1931_v16 }
  0x1d   : > { %1785 = vmatpush3.bf16.msra.mxu1 %v1941_v56  ;;  %v1946_v56 = vld [vmem:[%s2376_s3 + $0x8] sm:$0xff]  }
  0x1e   : > { %1786 = vmatprep.subr.bf16.mxu1 %v1942_v57 }
  0x1f   : > { %475 = vmatpush1.bf16.msra.mxu0 %v1933_v17 }
  0x20   : > { %476 = vmatprep.subr.bf16.mxu0 %v1934_v18 }
  0x21   : > { %1787 = vmatpush3.bf16.msra.mxu1 %v1942_v57 }
  0x22   : > { %1788 = vmatprep.subr.bf16.mxu1 %v1943_v58 }
  0x23   : > { %477 = vmatpush1.bf16.msra.mxu0 %v1936_v19 }
  0x25   : > { %1789 = vmatpush3.bf16.msra.mxu1 %v1943_v58 }
  0x26   : > { %495 = vmatmul.mubr.bf16.vlgmr.msra.gmra.mrb[0].mxu0 %v283_v12  ;;  %1790 = vmatprep.subr.bf16.mxu1 %v1944_v59 }
  0x27   : > { %504 = vmatprep.mubr.bf16.mxu0 %v2015_v2 }
  0x29   : > { %1791 = vmatpush3.bf16.msra.mxu1 %v1944_v59 }
  0x2c   : > { %1793 = vmatmul.mubr.bf16.vlgmr.msra.gmra.mrb[0].mxu1 %v284_v21 }
  0x2e   : > { %505 = vmatmul.mubr.bf16.gmra.mrb[4].mxu0 %v284_v21 }
  0xf9   : > { %v496_v28 = vpop.f32.mrb[0].mxu0 }
  0xfa   : > { %v497_v30 = vadd.f32 %v496_v28, %v322_v27  ;;  %v498_v31 = vpop.f32.mrb[1].mxu0 }
  0xfb   : > { %v500_v32 = vpop.f32.mrb[2].mxu0  ;;  %v499_v35 = vadd.f32 %v498_v31, %v326_v29 }
  0xfc   : > { %v501_v33 = vadd.f32 %v500_v32, %v322_v27  ;;  %v502_v34 = vpop.f32.mrb[3].mxu0  ;;  %v561_v37 = vmul.f32 0.17677669, %v497_v30 }
  0xfd   : > { %v503_v36 = vadd.f32 %v502_v34, %v326_v29 }
  0xfe   : > { %v562_v38 = vmul.f32 0.17677669, %v501_v33  ;;  %v2206_v33 = vsel %vm674_vm3, 65535, %v2015_v2 }
  0xff   : > { %v2146_v39 = vpack.c.bf16 %v503_v36, %v499_v35  ;;  %v1794_v6 = vpop.f32.mrb[0].mxu1 }
 0x100   : > { %v2148_v40 = vpack.c.bf16 %v562_v38, %v561_v37  ;;  %v547_v7 = vpop.f32.mrb[1].mxu1  ;;  %v556_v31 = vadd.f32 %v1794_v6, %v330_v5 }
 0x101   : > { %v506_v41 = vpop.f32.mrb[4].mxu0  ;;  %1892 = vmatprep.subr.msk.bf16.mxu0 %vm570_vm0, %v2146_v39  ;;  %v578_v42 = vsel %vm570_vm0, %v2146_v39, 0  ;;  %v548_v9 = vadd.f32 %v547_v7, %v330_v5  ;;  %v1795_v10 = vpop.f32.mrb[2].mxu1 }
 0x102   : > { %v508_v43 = vpop.f32.mrb[5].mxu0  ;;  %1797 = vmatpush3.bf16.xpose.msra.mxu0 %v578_v42  ;;  %1800 = vmatprep.mubr.msk.bf16.mxu0 %vm570_vm0, %v2148_v40  ;;  %v507_v48 = vadd.f32 %v506_v41, %v322_v27  ;;  %v550_v12 = vpop.f32.mrb[3].mxu1  ;;  %v2202_v32 = vpack.c.bf16 %v556_v31, %v556_v31 }
 0x103   : > { %v509_v44 = vadd.f32 %v508_v43, %v326_v29  ;;  %v510_v45 = vpop.f32.mrb[6].mxu0  ;;  %v551_v13 = vadd.f32 %v550_v12, %v330_v5 }
 0x104   : > { %v511_v46 = vpop.f32.mrb[7].mxu0  ;;  %v563_v50 = vmul.f32 0.17677669, %v507_v48  ;;  %v678_v34 = vand.u32 %v2206_v33, %v2202_v32 }
 0x105   : > { %v2156_v47 = vpack.c.bf16 %v509_v44, %v509_v44  ;;  %v2195_v14 = vpack.c.bf16 %v551_v13, %v548_v9 }
 0x106   : > { %v2162_v51 = vpack.c.bf16 %v563_v50, %v563_v50 }
 0x107   : > { %1893 = vmatprep.subr.msk.bf16.mxu0 %vm570_vm0, %v2156_v47  ;;  %v581_v49 = vsel %vm570_vm0, %v2156_v47, 0  ;;  %1804 = vmatprep.subr.bf16.mxu1 %v2195_v14 }
 0x108   : > { %1805 = vmatpush3.bf16.msra.mxu1 %v2195_v14 }
 0x109   : > { %1806 = vmatprep.subr.bf16.mxu1 %v678_v34 }
 0x10a   : > { %1799 = vmatpush3.bf16.xpose.msra.mxu0 %v581_v49 }
 0x10c   : > { %1807 = vmatpush3.bf16.msra.mxu1 %v678_v34 }
 0x111   : > { %1801 = vmatmul.mubr.msk.bf16.vlgmr.msra.gmra.mrb[8].mxu0 %vm570_vm0, %v2162_v51 }
 0x1e4   : > { %v1802_v60 = vpop.f32.mrb[8].mxu0 }
 0x1e5   : > { %v617_v61 = vpop.f32.mrb[9].mxu0  ;;  %v639_v62 = vsel %vm638_vm1, %v1802_v60, -inf }
 0x1e6   : > { %640 = vmax.xlane.f32.xlu1 %v639_v62  ;;  %v1803_v63 = vpop.f32.mrb[10].mxu0  ;;  %v632_v0 = vsel %vm631_vm2, %v617_v61, -inf }
 0x1e7   : > { %633 = vmax.xlane.f32.xlu0 %v632_v0  ;;  %v620_v1 = vpop.f32.mrb[11].mxu0 }
 0x1e8   : > { %v635_v3 = vsel %vm631_vm2, %v620_v1, -inf }
 0x1eb   : > { %636 = vmax.xlane.f32.xlu0 %v635_v3 }
 0x273   : > { %v641_v15 = vpop.xlane.xlu1 %640 }
 0x274   : > { %v644_v16 = vsub.f32 %v1802_v60, %v641_v15  ;;  %v634_v17 = vpop.xlane.xlu0 %633 }
 0x275   : > { %v642_v18 = vsub.f32 %v617_v61, %v634_v17 }
 0x276   : > { %v649_v19 = vmul.f32 1.442695, %v644_v16 }
 0x277   : > { %v645_v21 = vmul.f32 1.442695, %v642_v18 }
 0x278   : > { %v637_v22 = vpop.xlane.xlu0 %636 }
 0x279   : > { %1953 = vpow2.f32 %v645_v21  ;;  %v643_v23 = vsub.f32 %v620_v1, %v637_v22 }
 0x27a   : > { %1955 = vpow2.f32 %v649_v19 }
 0x27b   : > { %v647_v24 = vmul.f32 1.442695, %v643_v23 }
 0x27d   : > { %1957 = vpow2.f32 %v647_v24 }
 0x283   : > { %v1954_v25 = vpop.eup %1953 }
 0x284   : > { %v651_v26 = vsel %vm631_vm2, %v1954_v25, 0.0  ;;  %v1956_v27 = vpop.eup %1955 }
 0x285   : > { %652 = vadd.xlane.f32.xlu1 %v651_v26  ;;  %v657_v29 = vsel %vm638_vm1, %v1956_v27, 0.0 }
 0x287   : > { %v1958_v28 = vpop.eup %1957 }
 0x288   : > { %v654_v30 = vsel %vm631_vm2, %v1958_v28, 0.0 }
 0x289   : > { %658 = vadd.xlane.f32.xlu1 %v657_v29  ;;  %655 = vadd.xlane.f32.xlu0 %v654_v30 }
 0x29a   : > { %744 = vrot.lane.b32.xlu1 %v2156_v47, %s2016_s17 }
 0x29e   : > { %736 = vrot.lane.b32.xlu1 %v2148_v40, %s2016_s17 }
 0x29f   : > { %742 = vrot.lane.b32.xlu0 %v2146_v39, %s2016_s17 }
 0x2a2   : > { %738 = vrot.lane.b32.xlu1 %v2162_v51, %s2016_s17 }
 0x312   : > { %v653_v2 = vpop.xlane.xlu1 %652 }
 0x313   : > { %1959 = vrcp.f32 %v653_v2 }
 0x316   : > { %v659_v35 = vpop.xlane.xlu1 %658  ;;  %v656_v36 = vpop.xlane.xlu0 %655 }
 0x317   : > { %1961 = vrcp.f32 %v659_v35 }
 0x318   : > { %1963 = vrcp.f32 %v656_v36 }
 0x31a   : > { %v743_v37 = vpop.permute.xlu0 %742  ;;  %v745_v44 = vpop.permute.xlu1 %744 }
 0x31b   : > { %1894 = vmatprep.subr.msk.bf16.mxu1 %vm570_vm0, %v743_v37  ;;  %v753_v50 = vsel %vm570_vm0, %v743_v37, 0  ;;  %v756_v54 = vsel %vm570_vm0, %v745_v44, 0 }
 0x31d   : > { %v1960_v38 = vpop.eup %1959 }
 0x31e   : > { %v663_v45 = vmul.f32 %v1960_v38, %v1954_v25  ;;  %v737_v52 = vpop.permute.xlu1 %736 }
 0x321   : > { %v1962_v41 = vpop.eup %1961 }
 0x322   : > { %v1964_v42 = vpop.eup %1963  ;;  %v665_v43 = vmul.f32 %v1962_v41, %v1956_v27  ;;  %v739_v55 = vpop.permute.xlu1 %738 }
 0x323   : > { %v664_v46 = vmul.f32 %v1964_v42, %v1958_v28 }
 0x324   : > { %v667_v48 = vpack.c.bf16 %v665_v43, %v665_v43 }
 0x325   : > { %v666_v49 = vpack.c.bf16 %v664_v46, %v663_v45 }
 0x327   : > { %1808 = vmatprep.mubr.msk.bf16.mxu1 %vm631_vm2, %v666_v49 }
 0x328   : > { %1809 = vmatmul.mubr.msk.bf16.vlgmr.msra.gmra.mrb[4].mxu1 %vm631_vm2, %v667_v48 }
 0x329   : > { %1813 = vmatpush3.bf16.xpose.msra.mxu1 %v753_v50  ;;  %1816 = vmatprep.mubr.msk.bf16.mxu1 %vm570_vm0, %v737_v52 }
 0x32a   : > { %1895 = vmatprep.subr.msk.bf16.mxu1 %vm570_vm0, %v745_v44  ;;  %v1948_v44 = vld [vmem:[%s2376_s3 + $0x18] sm:$0xff]  }
 0x331   : > { %1815 = vmatpush3.bf16.xpose.msra.mxu1 %v756_v54 }
 0x332   : > { %1836 = vmatprep.subr.bf16.mxu1 %v1945_v53 }
 0x338   : > { %1817 = vmatmul.mubr.msk.bf16.vlgmr.msra.gmra.mrb[8].mxu1 %vm570_vm0, %v739_v55 }
 0x339   : > { %1837 = vmatpush3.bf16.msra.mxu1 %v1945_v53 }
 0x33a   : > { %1838 = vmatprep.subr.bf16.mxu1 %v1946_v56 }
 0x33d   : > { %1839 = vmatpush3.bf16.msra.mxu1 %v1946_v56 }
 0x3fb   : > { %v1810_v57 = vpop.f32.mrb[4].mxu1 }
 0x3fc   : > { %v714_v58 = vpop.f32.mrb[5].mxu1  ;;  %v729_v62 = vpack.c.bf16 %v1810_v57, %v1810_v57 }
 0x3fd   : > { %v1811_v59 = vpop.f32.mrb[6].mxu1 }
 0x3fe   : > { %v717_v60 = vpop.f32.mrb[7].mxu1 }
 0x3ff   : > { %v728_v61 = vpack.c.bf16 %v717_v60, %v714_v58 }
 0x401   : > { %1840 = vmatprep.mubr.msk.bf16.mxu1 %vm570_vm0, %v728_v61 }
 0x402   : > { %1841 = vmatmul.mubr.msk.bf16.vlgmr.msra.gmra.mrb[12].mxu1 %vm570_vm0, %v729_v62 }
 0x40b   : > { %v1818_v63 = vpop.f32.mrb[8].mxu1 }
 0x40c   : > { %v792_v0 = vpop.f32.mrb[9].mxu1  ;;  %v812_v6 = vsel %vm638_vm1, %v1818_v63, -inf }
 0x40d   : > { %v1819_v1 = vpop.f32.mrb[10].mxu1  ;;  %v806_v3 = vsel %vm631_vm2, %v792_v0, -inf }
 0x40e   : > { %807 = vmax.xlane.f32.xlu0 %v806_v3  ;;  %v795_v4 = vpop.f32.mrb[11].mxu1 }
 0x40f   : > { %v809_v5 = vsel %vm631_vm2, %v795_v4, -inf }
 0x410   : > { %810 = vmax.xlane.f32.xlu1 %v809_v5 }
 0x412   : > { %813 = vmax.xlane.f32.xlu0 %v812_v6 }
 0x49b   : > { %v808_v7 = vpop.xlane.xlu0 %807 }
 0x49c   : > { %v815_v9 = vsub.f32 %v792_v0, %v808_v7 }
 0x49d   : > { %v811_v10 = vpop.xlane.xlu1 %810 }
 0x49e   : > { %v818_v12 = vmul.f32 1.442695, %v815_v9  ;;  %v816_v13 = vsub.f32 %v795_v4, %v811_v10 }
 0x49f   : > { %v814_v15 = vpop.xlane.xlu0 %813 }
 0x4a0   : > { %1965 = vpow2.f32 %v818_v12  ;;  %v820_v16 = vmul.f32 1.442695, %v816_v13  ;;  %v817_v17 = vsub.f32 %v1818_v63, %v814_v15 }
 0x4a2   : > { %1967 = vpow2.f32 %v820_v16  ;;  %v822_v18 = vmul.f32 1.442695, %v817_v17 }
 0x4a4   : > { %1969 = vpow2.f32 %v822_v18 }
 0x4aa   : > { %v1966_v19 = vpop.eup %1965 }
 0x4ab   : > { %v824_v21 = vsel %vm631_vm2, %v1966_v19, 0.0 }
 0x4ac   : > { %v1968_v22 = vpop.eup %1967  ;;  %825 = vadd.xlane.f32.xlu0 %v824_v21 }
 0x4ad   : > { %v827_v25 = vsel %vm631_vm2, %v1968_v22, 0.0 }
 0x4ae   : > { %v1970_v23 = vpop.eup %1969 }
 0x4af   : > { %v830_v24 = vsel %vm638_vm1, %v1970_v23, 0.0 }
 0x4b0   : > { %831 = vadd.xlane.f32.xlu1 %v830_v24  ;;  %828 = vadd.xlane.f32.xlu0 %v827_v25 }
 0x4c1   : > { %845 = vrot.lane.b32.xlu1 %v2202_v32, %s2016_s17 }
 0x4c5   : > { %1047 = vrot.lane.b32.xlu1 %v2146_v39, %s2017_s22 }
 0x4c6   : > { %843 = vrot.lane.b32.xlu0 %v2195_v14, %s2016_s17 }
 0x4c9   : > { %1049 = vrot.lane.b32.xlu1 %v2156_v47, %s2017_s22 }
 0x4ca   : > { %1043 = vrot.lane.b32.xlu0 %v2148_v40, %s2017_s22 }
 0x4cd   : > { %1045 = vrot.lane.b32.xlu1 %v2162_v51, %s2017_s22 }
 0x4ce   : > { %1287 = vrot.lane.b32.xlu0 %v2146_v39, %s2018_s23 }
 0x4d1   : > { %1289 = vrot.lane.b32.xlu1 %v2156_v47, %s2018_s23 }
 0x4d2   : > { %1283 = vrot.lane.b32.xlu0 %v2148_v40, %s2018_s23 }
 0x4d5   : > { %1285 = vrot.lane.b32.xlu1 %v2162_v51, %s2018_s23  ;;  %v2260_v26 = vpop.f32.mrb[12].mxu1  ;;  %v1947_v51 = vld [vmem:[%s2376_s3 + $0x10] sm:$0xff]  }
 0x4d6   : > { %v2262_v27 = vpop.f32.mrb[13].mxu1 }
 0x4d7   : > { %v1843_v28 = vpop.f32.mrb[14].mxu1 }
 0x4d8   : > { %v2264_v29 = vpop.f32.mrb[15].mxu1 }
 0x539   : > { %v826_v30 = vpop.xlane.xlu0 %825 }
 0x53a   : > { %1971 = vrcp.f32 %v826_v30 }
 0x53d   : > { %v829_v31 = vpop.xlane.xlu0 %828  ;;  %v832_v39 = vpop.xlane.xlu1 %831 }
 0x53e   : > { %1973 = vrcp.f32 %v829_v31 }
 0x53f   : > { %1975 = vrcp.f32 %v832_v39 }
 0x541   : > { %v844_v47 = vpop.permute.xlu0 %843  ;;  %v846_v34 = vpop.permute.xlu1 %845 }
 0x542   : > { %v855_v40 = vand.u32 %v846_v34, %v2206_v33  ;;  %1820 = vmatprep.subr.bf16.mxu0 %v844_v47 }
 0x543   : > { %1821 = vmatpush3.bf16.msra.mxu0 %v844_v47 }
 0x544   : > { %1822 = vmatprep.subr.bf16.mxu0 %v855_v40  ;;  %v1972_v2 = vpop.eup %1971 }
 0x545   : > { %v836_v37 = vmul.f32 %v1972_v2, %v1966_v19  ;;  %v1048_v45 = vpop.permute.xlu1 %1047  ;;  %v1044_v54 = vpop.permute.xlu0 %1043 }
 0x546   : > { %v1058_v55 = vsel %vm570_vm0, %v1048_v45, 0 }
 0x547   : > { %1823 = vmatpush3.bf16.msra.mxu0 %v855_v40 }
 0x548   : > { %v1974_v35 = vpop.eup %1973  ;;  %1828 = vmatprep.subr.bf16.mxu0 %v1947_v51 }
 0x549   : > { %v1976_v36 = vpop.eup %1975  ;;  %v837_v38 = vmul.f32 %v1974_v35, %v1968_v22  ;;  %v1050_v56 = vpop.permute.xlu1 %1049 }
 0x54a   : > { %v838_v41 = vmul.f32 %v1976_v36, %v1970_v23  ;;  %v1061_v57 = vsel %vm570_vm0, %v1050_v56, 0  ;;  %v1288_v58 = vpop.permute.xlu0 %1287 }
 0x54b   : > { %v839_v42 = vpack.c.bf16 %v837_v38, %v836_v37  ;;  %v1298_v60 = vsel %vm570_vm0, %v1288_v58, 0 }
 0x54c   : > { %v840_v43 = vpack.c.bf16 %v838_v41, %v838_v41 }
 0x54d   : > { %1824 = vmatprep.mubr.msk.bf16.mxu0 %vm631_vm2, %v839_v42  ;;  %v1046_v59 = vpop.permute.xlu1 %1045 }
 0x54e   : > { %1825 = vmatmul.mubr.msk.bf16.vlgmr.msra.gmra.mrb[12].mxu0 %vm631_vm2, %v840_v43  ;;  %v1284_v61 = vpop.permute.xlu0 %1283 }
 0x54f   : > { %1829 = vmatpush3.bf16.msra.mxu0 %v1947_v51 }
 0x550   : > { %1830 = vmatprep.subr.bf16.mxu0 %v1948_v44 }
 0x551   : > { %v1290_v62 = vpop.permute.xlu1 %1289 }
 0x552   : > { %v1301_v63 = vsel %vm570_vm0, %v1290_v62, 0 }
 0x553   : > { %1831 = vmatpush3.bf16.msra.mxu0 %v1948_v44 }
 0x554   : > { %1896 = vmatprep.subr.msk.bf16.mxu0 %vm570_vm0, %v1048_v45 }
 0x555   : > { %v1286_v0 = vpop.permute.xlu1 %1285 }
 0x621   : > { %v1826_v46 = vpop.f32.mrb[12].mxu0 }
 0x622   : > { %v891_v48 = vpop.f32.mrb[13].mxu0  ;;  %v906_v53 = vpack.c.bf16 %v1826_v46, %v1826_v46 }
 0x623   : > { %v1827_v49 = vpop.f32.mrb[14].mxu0 }
 0x624   : > { %v894_v50 = vpop.f32.mrb[15].mxu0 }
 0x625   : > { %v905_v52 = vpack.c.bf16 %v894_v50, %v891_v48  ;;  %v1949_v48 = vld [vmem:[%s2376_s3 + $0x20] sm:$0xff]  }
 0x627   : > { %1832 = vmatprep.mubr.msk.bf16.mxu0 %vm570_vm0, %v905_v52 }
 0x628   : > { %1833 = vmatmul.mubr.msk.bf16.vlgmr.msra.gmra.mrb[16].mxu0 %vm570_vm0, %v906_v53 }
 0x629   : > { %1845 = vmatpush3.bf16.xpose.msra.mxu0 %v1058_v55  ;;  %1848 = vmatprep.mubr.msk.bf16.mxu0 %vm570_vm0, %v1044_v54 }
 0x62a   : > { %1897 = vmatprep.subr.msk.bf16.mxu0 %vm570_vm0, %v1050_v56 }
 0x631   : > { %1847 = vmatpush3.bf16.xpose.msra.mxu0 %v1061_v57 }
 0x632   : > { %1898 = vmatprep.subr.msk.bf16.mxu0 %vm570_vm0, %v1288_v58 }
 0x638   : > { %1849 = vmatmul.mubr.msk.bf16.vlgmr.msra.gmra.mrb[20].mxu0 %vm570_vm0, %v1046_v59 }
 0x639   : > { %1869 = vmatpush3.bf16.xpose.msra.mxu0 %v1298_v60  ;;  %1872 = vmatprep.mubr.msk.bf16.mxu0 %vm570_vm0, %v1284_v61 }
 0x63a   : > { %1899 = vmatprep.subr.msk.bf16.mxu0 %vm570_vm0, %v1290_v62 }
 0x641   : > { %1871 = vmatpush3.bf16.xpose.msra.mxu0 %v1301_v63 }
 0x648   : > { %1873 = vmatmul.mubr.msk.bf16.vlgmr.msra.gmra.mrb[24].mxu0 %vm570_vm0, %v1286_v0 }
 0x6fb   : > { %v1834_v1 = vpop.f32.mrb[16].mxu0 }
 0x6fc   : > { %v2290_v3 = vadd.f32 %v2260_v26, %v1834_v1  ;;  %v963_v4 = vpop.f32.mrb[17].mxu0 }
 0x6fd   : > { %v2293_v5 = vadd.f32 %v2262_v27, %v963_v4  ;;  %v1835_v6 = vpop.f32.mrb[18].mxu0 }
 0x6fe   : > { %v966_v7 = vpop.f32.mrb[19].mxu0 }
 0x6ff   : > { %v2296_v9 = vadd.f32 %v2264_v29, %v966_v7 }
 0x70b   : > { %v1850_v10 = vpop.f32.mrb[20].mxu0 }
 0x70c   : > { %v1097_v12 = vpop.f32.mrb[21].mxu0  ;;  %v1117_v18 = vsel %vm638_vm1, %v1850_v10, -inf }
 0x70d   : > { %v1851_v13 = vpop.f32.mrb[22].mxu0  ;;  %v1111_v15 = vsel %vm631_vm2, %v1097_v12, -inf }
 0x70e   : > { %1112 = vmax.xlane.f32.xlu0 %v1111_v15  ;;  %v1100_v16 = vpop.f32.mrb[23].mxu0 }
 0x70f   : > { %v1114_v17 = vsel %vm631_vm2, %v1100_v16, -inf }
 0x710   : > { %1115 = vmax.xlane.f32.xlu1 %v1114_v17 }
 0x712   : > { %1118 = vmax.xlane.f32.xlu0 %v1117_v18 }
 0x71b   : > { %v2301_v19 = vpop.f32.mrb[24].mxu0 }
 0x71c   : > { %v2303_v21 = vpop.f32.mrb[25].mxu0  ;;  %v1357_v38 = vsel %vm638_vm1, %v2301_v19, -inf }
 0x71d   : > { %v1875_v22 = vpop.f32.mrb[26].mxu0  ;;  %v1351_v36 = vsel %vm631_vm2, %v2303_v21, -inf }
 0x71e   : > { %v1340_v23 = vpop.f32.mrb[27].mxu0 }
 0x71f   : > { %v1354_v37 = vsel %vm631_vm2, %v1340_v23, -inf }
 0x79b   : > { %v1113_v24 = vpop.xlane.xlu0 %1112 }
 0x79c   : > { %v1120_v25 = vsub.f32 %v1097_v12, %v1113_v24 }
 0x79d   : > { %v1116_v26 = vpop.xlane.xlu1 %1115 }
 0x79e   : > { %v1123_v27 = vmul.f32 1.442695, %v1120_v25  ;;  %v1121_v28 = vsub.f32 %v1100_v16, %v1116_v26  ;;  %v1950_v16 = vld [vmem:[%s2376_s3 + $0x28] sm:$0xff]  }
 0x79f   : > { %v1119_v29 = vpop.xlane.xlu0 %1118 }
 0x7a0   : > { %1977 = vpow2.f32 %v1123_v27  ;;  %v1125_v30 = vmul.f32 1.442695, %v1121_v28  ;;  %v1122_v31 = vsub.f32 %v1850_v10, %v1119_v29 }
 0x7a2   : > { %1979 = vpow2.f32 %v1125_v30  ;;  %v1127_v39 = vmul.f32 1.442695, %v1122_v31 }
 0x7a4   : > { %1981 = vpow2.f32 %v1127_v39 }
 0x7aa   : > { %v1978_v47 = vpop.eup %1977 }
 0x7ab   : > { %v1129_v34 = vsel %vm631_vm2, %v1978_v47, 0.0 }
 0x7ac   : > { %v1980_v40 = vpop.eup %1979  ;;  %1130 = vadd.xlane.f32.xlu0 %v1129_v34 }
 0x7ad   : > { %v1132_v35 = vsel %vm631_vm2, %v1980_v40, 0.0 }
 0x7ae   : > { %v1982_v51 = vpop.eup %1981 }
 0x7af   : > { %v1135_v2 = vsel %vm638_vm1, %v1982_v51, 0.0 }
 0x7b0   : > { %1136 = vadd.xlane.f32.xlu1 %v1135_v2  ;;  %1133 = vadd.xlane.f32.xlu0 %v1132_v35 }
 0x7c1   : > { %1148 = vrot.lane.b32.xlu1 %v2202_v32, %s2017_s22 }
 0x7c6   : > { %1146 = vrot.lane.b32.xlu0 %v2195_v14, %s2017_s22 }
 0x7e5   : > { %1352 = vmax.xlane.f32.xlu1 %v1351_v36  ;;  %1355 = vmax.xlane.f32.xlu0 %v1354_v37 }
 0x7e9   : > { %1358 = vmax.xlane.f32.xlu0 %v1357_v38 }
 0x839   : > { %v1131_v41 = vpop.xlane.xlu0 %1130 }
 0x83a   : > { %1983 = vrcp.f32 %v1131_v41 }
 0x83d   : > { %v1134_v42 = vpop.xlane.xlu0 %1133  ;;  %v1137_v43 = vpop.xlane.xlu1 %1136 }
 0x83e   : > { %1985 = vrcp.f32 %v1134_v42 }
 0x83f   : > { %1987 = vrcp.f32 %v1137_v43 }
 0x841   : > { %v1147_v44 = vpop.permute.xlu0 %1146  ;;  %v1149_v45 = vpop.permute.xlu1 %1148 }
 0x842   : > { %v1158_v46 = vand.u32 %v1149_v45, %v2206_v33  ;;  %1852 = vmatprep.subr.bf16.mxu1 %v1147_v44 }
 0x843   : > { %1853 = vmatpush3.bf16.msra.mxu1 %v1147_v44 }
 0x844   : > { %1854 = vmatprep.subr.bf16.mxu1 %v1158_v46  ;;  %v1984_v49 = vpop.eup %1983 }
 0x845   : > { %v1141_v53 = vmul.f32 %v1984_v49, %v1978_v47 }
 0x847   : > { %1855 = vmatpush3.bf16.msra.mxu1 %v1158_v46 }
 0x848   : > { %v1986_v50 = vpop.eup %1985  ;;  %1860 = vmatprep.subr.bf16.mxu1 %v1949_v48 }
 0x849   : > { %v1988_v52 = vpop.eup %1987  ;;  %v1142_v54 = vmul.f32 %v1986_v50, %v1980_v40 }
 0x84a   : > { %v1143_v55 = vmul.f32 %v1988_v52, %v1982_v51  ;;  %v1951_v51 = vld [vmem:[%s2376_s3 + $0x30] sm:$0xff]  }
 0x84b   : > { %v1144_v56 = vpack.c.bf16 %v1142_v54, %v1141_v53 }
 0x84c   : > { %v1145_v57 = vpack.c.bf16 %v1143_v55, %v1143_v55 }
 0x84d   : > { %1856 = vmatprep.mubr.msk.bf16.mxu1 %vm631_vm2, %v1144_v56 }
 0x84e   : > { %1857 = vmatmul.mubr.msk.bf16.vlgmr.msra.gmra.mrb[16].mxu1 %vm631_vm2, %v1145_v57 }
 0x84f   : > { %1861 = vmatpush3.bf16.msra.mxu1 %v1949_v48 }
 0x850   : > { %1862 = vmatprep.subr.bf16.mxu1 %v1950_v16 }
 0x853   : > { %1863 = vmatpush3.bf16.msra.mxu1 %v1950_v16 }
 0x872   : > { %v1356_v58 = vpop.xlane.xlu0 %1355  ;;  %v1353_v59 = vpop.xlane.xlu1 %1352 }
 0x873   : > { %v1361_v60 = vsub.f32 %v1340_v23, %v1356_v58  ;;  %v1360_v62 = vsub.f32 %v2303_v21, %v1353_v59 }
 0x875   : > { %v1365_v61 = vmul.f32 1.442695, %v1361_v60  ;;  %v1363_v1 = vmul.f32 1.442695, %v1360_v62 }
 0x876   : > { %v1359_v63 = vpop.xlane.xlu0 %1358 }
 0x877   : > { %1989 = vpow2.f32 %v1365_v61  ;;  %v1362_v0 = vsub.f32 %v2301_v19, %v1359_v63 }
 0x879   : > { %v1367_v4 = vmul.f32 1.442695, %v1362_v0 }
 0x87b   : > { %1991 = vpow2.f32 %v1367_v4 }
 0x87c   : > { %1993 = vpow2.f32 %v1363_v1 }
 0x881   : > { %v1990_v6 = vpop.eup %1989 }
 0x882   : > { %v1372_v7 = vsel %vm631_vm2, %v1990_v6, 0.0 }
 0x883   : > { %1373 = vadd.xlane.f32.xlu0 %v1372_v7 }
 0x885   : > { %v1992_v10 = vpop.eup %1991 }
 0x886   : > { %v1375_v12 = vsel %vm638_vm1, %v1992_v10, 0.0  ;;  %v1994_v13 = vpop.eup %1993 }
 0x887   : > { %1376 = vadd.xlane.f32.xlu1 %v1375_v12  ;;  %v1369_v15 = vsel %vm631_vm2, %v1994_v13, 0.0 }
 0x88b   : > { %1370 = vadd.xlane.f32.xlu1 %v1369_v15 }
 0x899   : > { %1386 = vrot.lane.b32.xlu0 %v2195_v14, %s2018_s23 }
 0x89c   : > { %1388 = vrot.lane.b32.xlu1 %v2202_v32, %s2018_s23 }
 0x910   : > { %v1374_v17 = vpop.xlane.xlu0 %1373 }
 0x911   : > { %1995 = vrcp.f32 %v1374_v17 }
 0x914   : > { %v1387_v18 = vpop.permute.xlu0 %1386  ;;  %v1377_v19 = vpop.xlane.xlu1 %1376 }
 0x915   : > { %1876 = vmatprep.subr.bf16.mxu1 %v1387_v18 }
 0x918   : > { %v1371_v21 = vpop.xlane.xlu1 %1370 }
 0x919   : > { %1997 = vrcp.f32 %v1371_v21 }
 0x91a   : > { %1999 = vrcp.f32 %v1377_v19 }
 0x91b   : > { %v1996_v22 = vpop.eup %1995 }
 0x91c   : > { %v1382_v29 = vmul.f32 %v1996_v22, %v1990_v6  ;;  %v1389_v14 = vpop.permute.xlu1 %1388 }
 0x91d   : > { %v1398_v47 = vand.u32 %v1389_v14, %v2206_v33  ;;  %v1952_v33 = vld [vmem:[%s2376_s3 + $0x38] sm:$0xff]  }
 0x921   : > { %v1858_v23 = vpop.f32.mrb[16].mxu1 }
 0x922   : > { %v1194_v24 = vpop.f32.mrb[17].mxu1  ;;  %v1209_v31 = vpack.c.bf16 %v1858_v23, %v1858_v23 }
 0x923   : > { %v1998_v25 = vpop.eup %1997  ;;  %v1859_v26 = vpop.f32.mrb[18].mxu1 }
 0x924   : > { %v1197_v27 = vpop.f32.mrb[19].mxu1  ;;  %v1381_v28 = vmul.f32 %v1998_v25, %v1994_v13  ;;  %v2000_v39 = vpop.eup %1999 }
 0x925   : > { %v1208_v30 = vpack.c.bf16 %v1197_v27, %v1194_v24  ;;  %v1383_v34 = vmul.f32 %v2000_v39, %v1992_v10  ;;  %v1714_v27 = vld [vmem:[%s2378_s5] ss:$0 sm:$0xff] }
 0x926   : > { %v1384_v32 = vpack.c.bf16 %v1382_v29, %v1381_v28  ;;  %v1715_v29 = vld [vmem:[%s2379_s6] ss:$0 sm:$0xff] }
 0x927   : > { %1864 = vmatprep.mubr.msk.bf16.mxu1 %vm570_vm0, %v1208_v30  ;;  %v1385_v40 = vpack.c.bf16 %v1383_v34, %v1383_v34 }
 0x928   : > { %1865 = vmatmul.mubr.msk.bf16.vlgmr.msra.gmra.mrb[20].mxu1 %vm570_vm0, %v1209_v31 }
 0x929   : > { %1877 = vmatpush3.bf16.msra.mxu1 %v1387_v18  ;;  %1880 = vmatprep.mubr.msk.bf16.mxu1 %vm631_vm2, %v1384_v32 }
 0x92a   : > { %1878 = vmatprep.subr.bf16.mxu1 %v1398_v47 }
 0x92d   : > { %1879 = vmatpush3.bf16.msra.mxu1 %v1398_v47 }
 0x92e   : > { %1884 = vmatprep.subr.bf16.mxu1 %v1951_v51 }
 0x930   : > { %1881 = vmatmul.mubr.msk.bf16.vlgmr.msra.gmra.mrb[24].mxu1 %vm631_vm2, %v1385_v40 }
 0x931   : > { %1885 = vmatpush3.bf16.msra.mxu1 %v1951_v51 }
 0x932   : > { %1886 = vmatprep.subr.bf16.mxu1 %v1952_v33 }
 0x935   : > { %1887 = vmatpush3.bf16.msra.mxu1 %v1952_v33 }
 0x9fb   : > { %v1866_v2 = vpop.f32.mrb[20].mxu1 }
 0x9fc   : > { %v1282_v35 = vadd.f32 %v1866_v2, %v2290_v3  ;;  %v1266_v36 = vpop.f32.mrb[21].mxu1  ;;  %v1713_v3 = vld [vmem:[%s2377_s4] ss:$0 sm:$0xff] }
 0x9fd   : > { %v1280_v37 = vadd.f32 %v1266_v36, %v2293_v5  ;;  %v1867_v38 = vpop.f32.mrb[22].mxu1 }
 0x9fe   : > { %v1269_v41 = vpop.f32.mrb[23].mxu1 }
 0x9ff   : > { %v1281_v42 = vadd.f32 %v1269_v41, %v2296_v9 }
 0xa03   : > { %v1882_v43 = vpop.f32.mrb[24].mxu1 }
 0xa04   : > { %v1434_v44 = vpop.f32.mrb[25].mxu1  ;;  %v1449_v49 = vpack.c.bf16 %v1882_v43, %v1882_v43 }
 0xa05   : > { %v1883_v45 = vpop.f32.mrb[26].mxu1 }
 0xa06   : > { %v1437_v46 = vpop.f32.mrb[27].mxu1 }
 0xa07   : > { %v1448_v48 = vpack.c.bf16 %v1437_v46, %v1434_v44 }
 0xa09   : > { %1888 = vmatprep.mubr.msk.bf16.mxu1 %vm570_vm0, %v1448_v48 }
 0xa0a   : > { %1889 = vmatmul.mubr.msk.bf16.vlgmr.msra.gmra.mrb[28].mxu1 %vm570_vm0, %v1449_v49 }
 0xadd   : > { %v1890_v50 = vpop.f32.mrb[28].mxu1 }
 0xade   : > { %v1522_v5 = vadd.f32 %v1890_v50, %v1282_v35  ;;  %v1506_v52 = vpop.f32.mrb[29].mxu1 }
 0xadf   : > { %v1520_v53 = vadd.f32 %v1506_v52, %v1280_v37  ;;  %v1891_v54 = vpop.f32.mrb[30].mxu1 }
 0xae0   : > { %v1532_v9 = vadd.f32 %v1713_v3, %v1522_v5  ;;  %v1509_v55 = vpop.f32.mrb[31].mxu1 }
 0xae1   : > { %v1530_v56 = vadd.f32 %v1713_v3, %v1520_v53  ;;  %v1521_v57 = vadd.f32 %v1509_v55, %v1281_v42 }
 0xae2   : > { %v1535_v58 = vadd.f32 %v1532_v9, %v2131_v20 }
 0xae3   : > { %v1531_v59 = vadd.f32 %v1713_v3, %v1521_v57  ;;  %v1533_v60 = vadd.f32 %v1530_v56, %v2097_v8 }
 0xae4   : > { %v1542_v61 = vsel %vm674_vm3, %v1535_v58, 0.0 }
 0xae5   : > { %1543 = vadd.xlane.f32.xlu1 %v1542_v61  ;;  %1538 = vadd.xlane.f32.xlu0 %v1533_v60  ;;  %v1534_v62 = vadd.f32 %v1531_v59, %v2105_v11 }
 0xae9   : > { %1540 = vadd.xlane.f32.xlu0 %v1534_v62 }
 0xb72   : > { %v1544_v63 = vpop.xlane.xlu1 %1543  ;;  %v1539_v0 = vpop.xlane.xlu0 %1538 }
 0xb73   : > { %v1548_v1 = vmul.f32 0.0078125, %v1544_v63  ;;  %v1546_v4 = vmul.f32 0.0078125, %v1539_v0 }
 0xb75   : > { %v1551_v6 = vsub.f32 %v1535_v58, %v1548_v1  ;;  %v1549_v7 = vsub.f32 %v1533_v60, %v1546_v4 }
 0xb76   : > { %v1541_v10 = vpop.xlane.xlu0 %1540 }
 0xb77   : > { %v1547_v12 = vmul.f32 0.0078125, %v1541_v10  ;;  %v1552_v13 = vmul.f32 %v1549_v7, %v1549_v7  ;;  %v1554_v20 = vmul.f32 %v1551_v6, %v1551_v6 }
 0xb79   : > { %v1550_v15 = vsub.f32 %v1534_v62, %v1547_v12  ;;  %1555 = vadd.xlane.f32.xlu1 %v1552_v13  ;;  %v1559_v16 = vsel %vm674_vm3, %v1554_v20, 0.0 }
 0xb7b   : > { %v1553_v8 = vmul.f32 %v1550_v15, %v1550_v15 }
 0xb7d   : > { %1560 = vadd.xlane.f32.xlu1 %v1559_v16  ;;  %1557 = vadd.xlane.f32.xlu0 %v1553_v8 }
 0xc06   : > { %v1556_v17 = vpop.xlane.xlu1 %1555 }
 0xc07   : > { %v1562_v11 = vmul.f32 0.0078125, %v1556_v17 }
 0xc09   : > { %v1565_v18 = vadd.f32 1e-05, %v1562_v11 }
 0xc0a   : > { %v1561_v19 = vpop.xlane.xlu1 %1560  ;;  %v1558_v21 = vpop.xlane.xlu0 %1557 }
 0xc0b   : > { %2001 = vrsqrt.f32 %v1565_v18  ;;  %v1564_v22 = vmul.f32 0.0078125, %v1561_v19  ;;  %v1563_v23 = vmul.f32 0.0078125, %v1558_v21 }
 0xc0d   : > { %v1567_v24 = vadd.f32 1e-05, %v1564_v22  ;;  %v1566_v25 = vadd.f32 1e-05, %v1563_v23 }
 0xc0f   : > { %2003 = vrsqrt.f32 %v1567_v24 }
 0xc10   : > { %2005 = vrsqrt.f32 %v1566_v25 }
 0xc15   : > { %v2002_v26 = vpop.eup %2001 }
 0xc16   : > { %v1571_v28 = vmul.f32 %v2002_v26, %v1549_v7 }
 0xc18   : > { %v1580_v14 = vmul.f32 %v1714_v27, %v1571_v28 }
 0xc19   : > { %v2004_v30 = vpop.eup %2003 }
 0xc1a   : > { %v2006_v31 = vpop.eup %2005  ;;  %v1589_v32 = vadd.f32 %v1715_v29, %v1580_v14  ;;  %v1573_v39 = vmul.f32 %v2004_v30, %v1551_v6 }
 0xc1b   : > { %v1572_v47 = vmul.f32 %v2006_v31, %v1550_v15 }
 0xc1c   : > { %1592 = vst [vmem:[%s278_s26] sm:$0xff] %v1589_v32  ;;  %v1582_v34 = vmul.f32 %v1714_v27, %v1573_v39 }
 0xc1d   : > { %v1581_v40 = vmul.f32 %v1714_v27, %v1572_v47 }
 0xc1e   : > { %v1591_v51 = vadd.f32 %v1715_v29, %v1582_v34 }
 0xc1f   : > { %v1590_v33 = vadd.f32 %v1715_v29, %v1581_v40 }
 0xc20   : > { %1594 = vst [vmem:[%s278_s26 + $0x10] sm:$0x1] %v1591_v51 }
 0xc21   : > { %1593 = vst [vmem:[%s278_s26 + $0x8] sm:$0xff] %v1590_v33 }
 0xc22 PF: > { %s17_s24 = sadd.s32 1, %s2013_s24  }
 0xc23   : > { %p14_p4 = scmp.ge.s32.totalorder %s17_s24, 4  }
 0xc25   :  { %16 = sbr.rel (!%p14_p4) target bundleno = 1 (0x1), region = 78 }

</bundles_post_ra>
